<compile_context>
chip_gen: v5e
topology: v5e:2x2
jax: 0.10.0
libtpu: 0.0.40
codegen_flags: <defaults>
</compile_context>

<pallas_src>
import math
import jax
import jax.numpy as jnp
from jax import lax
from jax.experimental import pallas as pl
from jax.experimental.pallas import tpu as pltpu


def _layernorm(x, gamma, beta, eps=1e-5):
    mean = jnp.mean(x, axis=-1, keepdims=True)
    var = jnp.mean(jnp.square(x - mean), axis=-1, keepdims=True)
    return (x - mean) * lax.rsqrt(var + eps) * gamma + beta


def make_transformer_block_kernel(num_heads):
    def kernel(xq_ref, x_ref, xT_ref,
               wq_ref, bq_ref, wkT_ref, bkT_ref, wv_ref, bv_ref,
               wo_ref, bo_ref,
               g1_ref, be1_ref,
               w1_ref, bf1_ref, w2_ref, bf2_ref,
               g2_ref, be2_ref,
               o_ref,
               kT_scr, v_scr):
        x_t = xq_ref[0]                       # (T, E) f32 : query rows + residual for this tile
        T, E = x_t.shape
        x_t_bf = x_t.astype(jnp.bfloat16)

        # ---- K / V projections: once per batch (first sequence tile), cached in VMEM scratch ----
        @pl.when(pl.program_id(1) == 0)
        def _():
            x_f = x_ref[0]                    # (S, E) bf16
            xT_f = xT_ref[0]                  # (E, S) bf16 (pre-transposed host-side)

            def kv_body(h, carry):
                # K stored transposed (hd, S): canonical MXU contraction, no in-kernel transpose.
                kT = jnp.dot(wkT_ref[h], xT_f,
                             preferred_element_type=jnp.float32) + bkT_ref[h]
                kT_scr[h] = kT.astype(jnp.bfloat16)
                v = jnp.dot(x_f, wv_ref[h],
                            preferred_element_type=jnp.float32) + bv_ref[h]
                v_scr[h] = v.astype(jnp.bfloat16)
                return carry

            lax.fori_loop(0, num_heads, kv_body, 0, unroll=True)

        # ---- per-head attention; head merge folded into the Wo projection (accumulated) ----
        def head_body(h, acc):
            # 1/sqrt(hd) is folded into Wq / bq host-side.
            q_h = (jnp.dot(x_t_bf, wq_ref[h], preferred_element_type=jnp.float32)
                   + bq_ref[h]).astype(jnp.bfloat16)                          # (T, hd)
            s = jnp.dot(q_h, kT_scr[h], preferred_element_type=jnp.float32)   # (T, S)
            m = jnp.max(s, axis=-1, keepdims=True)                            # softmax stats f32
            e = jnp.exp(s - m)
            r = pl.reciprocal(jnp.sum(e, axis=-1, keepdims=True), approx=True)
            # Normalize AFTER the PV matmul: (T, hd) scale instead of the (T, S) prob matrix.
            o_h = jnp.dot(e.astype(jnp.bfloat16), v_scr[h],
                          preferred_element_type=jnp.float32) * r             # (T, hd)
            return acc + jnp.dot(o_h.astype(jnp.bfloat16), wo_ref[h],
                                 preferred_element_type=jnp.float32)          # (T, E)

        attention = lax.fori_loop(0, num_heads, head_body,
                                  jnp.zeros((T, E), jnp.float32),
                                  unroll=True) + bo_ref[...]

        # out = norm1(attention + embeddings)
        out = _layernorm(attention + x_t, g1_ref[...], be1_ref[...])

        # feed_forward(out) = Linear -> ReLU -> Linear
        ff = jnp.dot(out.astype(jnp.bfloat16), w1_ref[...],
                     preferred_element_type=jnp.float32) + bf1_ref[...]
        ff = jnp.maximum(ff, 0.0)
        ff = jnp.dot(ff.astype(jnp.bfloat16), w2_ref[...],
                     preferred_element_type=jnp.float32) + bf2_ref[...]

        # out = norm2(attention + feed_forward(out)) : residual is `attention`, per the spec.
        y = _layernorm(attention + ff, g2_ref[...], be2_ref[...])
        o_ref[0] = y.astype(o_ref.dtype)

    return kernel


def _vmem_limit_bytes():
    cap = 128 * 1024 * 1024
    try:
        cap = int(getattr(pltpu.get_tpu_info(), "vmem_capacity_bytes", cap))
    except Exception:
        pass
    # v7x (64 MiB VMEM) -> ~56 MiB; v5e / v6e (128 MiB) -> 100 MiB.
    return int(min(cap - 8 * 1024 * 1024, 100 * 1024 * 1024))


def transformer_block(x, params, num_heads, *, tile_s=None):
    """x: (B, S, E) float32. params: dict of f32 weights (see init_params)."""
    B, S, E = x.shape
    assert E % num_heads == 0, "embed_size must be divisible by head_count"
    hd = E // num_heads
    scale = 1.0 / math.sqrt(hd)

    if tile_s is None:
        # 256-aligned tiles keep the 256x256 MXU (v6e/v7x) full; fall back for short sequences.
        tile_s = next((c for c in (256, 128, 64, 32, 16, 8) if S % c == 0), S)
    assert S % tile_s == 0, "sequence length must be divisible by the sequence tile"

    bf16 = lambda a: a.astype(jnp.bfloat16)
    f32 = lambda a: a.astype(jnp.float32)

    # Head-major weight layouts (host-side, free): per-head slabs are indexed on the leading dim
    # inside the kernel -> no sub-128-lane column slices / masked stores in the hot loop.
    wq_h = bf16((params["wq"] * scale).reshape(E, num_heads, hd).transpose(1, 0, 2))   # (H, E, hd)
    bq_h = f32((params["bq"] * scale).reshape(1, num_heads, hd).transpose(1, 0, 2))    # (H, 1, hd)
    wkT_h = bf16(params["wk"].reshape(E, num_heads, hd).transpose(1, 2, 0))            # (H, hd, E)
    bkT_h = f32(params["bk"].reshape(1, num_heads, hd).transpose(1, 2, 0))             # (H, hd, 1)
    wv_h = bf16(params["wv"].reshape(E, num_heads, hd).transpose(1, 0, 2))             # (H, E, hd)
    bv_h = f32(params["bv"].reshape(1, num_heads, hd).transpose(1, 0, 2))              # (H, 1, hd)
    wo_h = bf16(params["wo"].reshape(num_heads, hd, E))                                # (H, hd, E)

    x_kv = bf16(x)                        # (B, S, E) bf16: halves the full-seq DMA / VMEM block
    x_kvT = bf16(jnp.swapaxes(x, 1, 2))   # (B, E, S) bf16: K produced pre-transposed

    const3 = lambda shape: pl.BlockSpec(shape, lambda b, s: (0, 0, 0))
    const2 = lambda shape: pl.BlockSpec(shape, lambda b, s: (0, 0))

    in_specs = [
        pl.BlockSpec((1, tile_s, E), lambda b, s: (b, s, 0)),   # query / residual rows (f32)
        pl.BlockSpec((1, S, E), lambda b, s: (b, 0, 0)),        # full sequence (bf16) for V
        pl.BlockSpec((1, E, S), lambda b, s: (b, 0, 0)),        # full sequence^T (bf16) for K^T
        const3((num_heads, E, hd)), const3((num_heads, 1, hd)),     # Wq (scaled), bq (scaled)
        const3((num_heads, hd, E)), const3((num_heads, hd, 1)),     # Wk^T, bk^T
        const3((num_heads, E, hd)), const3((num_heads, 1, hd)),     # Wv, bv
        const3((num_heads, hd, E)), const2((1, E)),                 # Wo (head-major), bo
        const2((1, E)), const2((1, E)),                             # norm1 gamma, beta
        const2((E, E)), const2((1, E)),                             # ff W1, b1
        const2((E, E)), const2((1, E)),                             # ff W2, b2
        const2((1, E)), const2((1, E)),                             # norm2 gamma, beta
    ]

    return pl.pallas_call(
        make_transformer_block_kernel(num_heads),
        out_shape=jax.ShapeDtypeStruct((B, S, E), x.dtype),
        grid_spec=pltpu.PrefetchScalarGridSpec(
            num_scalar_prefetch=0,
            grid=(B, S // tile_s),
            in_specs=in_specs,
            out_specs=pl.BlockSpec((1, tile_s, E), lambda b, s: (b, s, 0)),
            scratch_shapes=[
                pltpu.VMEM((num_heads, hd, S), jnp.bfloat16),   # cached K^T (head-major)
                pltpu.VMEM((num_heads, S, hd), jnp.bfloat16),   # cached V   (head-major)
            ],
        ),
        compiler_params=pltpu.CompilerParams(
            # The sequence axis carries the K/V-cache dependency -> "arbitrary" (inner, sequential);
            # the batch axis is independent and shards across cores.
            dimension_semantics=("parallel", "arbitrary"),
            vmem_limit_bytes=_vmem_limit_bytes(),
        ),
    )(x, x_kv, x_kvT,
      wq_h, bq_h, wkT_h, bkT_h, wv_h, bv_h, wo_h, f32(params["bo"]),
      f32(params["g1"]), f32(params["be1"]),
      bf16(params["w1"]), f32(params["bf1"]),
      bf16(params["w2"]), f32(params["bf2"]),
      f32(params["g2"]), f32(params["be2"]))


def init_params(key, embed_size):
    """Deterministic parameter init. Linear weights stored as (in, out) so the
    kernel computes x @ W + b (equivalent to PyTorch's x @ W.T + b)."""
    E = embed_size
    ks = jax.random.split(key, 6)
    bound = 1.0 / math.sqrt(E)

    def lin(k):
        kw, kb = jax.random.split(k)
        w = jax.random.uniform(kw, (E, E), jnp.float32, -bound, bound)
        b = jax.random.uniform(kb, (1, E), jnp.float32, -bound, bound)
        return w, b

    wq, bq = lin(ks[0])
    wk, bk = lin(ks[1])
    wv, bv = lin(ks[2])
    wo, bo = lin(ks[3])
    w1, bf1 = lin(ks[4])
    w2, bf2 = lin(ks[5])
    return dict(
        wq=wq, bq=bq, wk=wk, bk=bk, wv=wv, bv=bv, wo=wo, bo=bo,
        g1=jnp.ones((1, E), jnp.float32), be1=jnp.zeros((1, E), jnp.float32),
        w1=w1, bf1=bf1, w2=w2, bf2=bf2,
        g2=jnp.ones((1, E), jnp.float32), be2=jnp.zeros((1, E), jnp.float32),
    )


def reference_transformer_block(x, params, num_heads):
    """Pure-JAX f32 reference matching the PyTorch module semantics."""
    B, S, E = x.shape
    hd = E // num_heads
    q = (x @ params["wq"] + params["bq"]).reshape(B, S, num_heads, hd)
    k = (x @ params["wk"] + params["bk"]).reshape(B, S, num_heads, hd)
    v = (x @ params["wv"] + params["bv"]).reshape(B, S, num_heads, hd)
    scores = jnp.einsum("bqhd,bkhd->bhqk", q, k) / math.sqrt(hd)
    p = jax.nn.softmax(scores, axis=-1)
    attn = jnp.einsum("bhqk,bkhd->bqhd", p, v).reshape(B, S, E)
    attention = attn @ params["wo"] + params["bo"]

    def ln(t, g, b, eps=1e-5):
        mu = jnp.mean(t, axis=-1, keepdims=True)
        var = jnp.mean((t - mu) ** 2, axis=-1, keepdims=True)
        return (t - mu) * lax.rsqrt(var + eps) * g + b

    out = ln(attention + x, params["g1"], params["be1"])
    ff = jnp.maximum(out @ params["w1"] + params["bf1"], 0.0) @ params["w2"] + params["bf2"]
    return ln(attention + ff, params["g2"], params["be2"])


if __name__ == "__main__":
    B, S, E, H = 2, 8, 32, 4   # batch, seq, embed_size, head_count
    key = jax.random.PRNGKey(0)
    kx, kp = jax.random.split(key)
    x = jax.random.normal(kx, (B, S, E), jnp.float32)
    params = init_params(kp, E)

    y = transformer_block(x, params, num_heads=H)
    y = jax.block_until_ready(y)
    assert y.shape == (B, S, E) and y.dtype == jnp.float32

    # Sanity check vs. f32 reference (loose tolerance: bf16 MXU operands + approx reciprocal).
    y_ref = reference_transformer_block(x, params, H)
    err = float(jnp.max(jnp.abs(y - y_ref)))
    assert err < 1e-1, f"max abs error too large: {err}"
    print("KERNEL_OK")
</pallas_src>

<mosaic_0001>
module attributes {stable_mosaic.version = 11 : i64} {
  func.func @kernel(%arg0: i32, %arg1: i32, %arg2: memref<1x8x32xf32, #tpu.memory_space<vmem>>, %arg3: memref<1x8x32xbf16, #tpu.memory_space<vmem>>, %arg4: memref<1x32x8xbf16, #tpu.memory_space<vmem>>, %arg5: memref<4x32x8xbf16, #tpu.memory_space<vmem>>, %arg6: memref<4x1x8xf32, #tpu.memory_space<vmem>>, %arg7: memref<4x8x32xbf16, #tpu.memory_space<vmem>>, %arg8: memref<4x8x1xf32, #tpu.memory_space<vmem>>, %arg9: memref<4x32x8xbf16, #tpu.memory_space<vmem>>, %arg10: memref<4x1x8xf32, #tpu.memory_space<vmem>>, %arg11: memref<4x8x32xbf16, #tpu.memory_space<vmem>>, %arg12: memref<1x32xf32, #tpu.memory_space<vmem>>, %arg13: memref<1x32xf32, #tpu.memory_space<vmem>>, %arg14: memref<1x32xf32, #tpu.memory_space<vmem>>, %arg15: memref<32x32xbf16, #tpu.memory_space<vmem>>, %arg16: memref<1x32xf32, #tpu.memory_space<vmem>>, %arg17: memref<32x32xbf16, #tpu.memory_space<vmem>>, %arg18: memref<1x32xf32, #tpu.memory_space<vmem>>, %arg19: memref<1x32xf32, #tpu.memory_space<vmem>>, %arg20: memref<1x32xf32, #tpu.memory_space<vmem>>, %arg21: memref<1x8x32xf32, #tpu.memory_space<vmem>>, %arg22: memref<4x8x8xbf16, #tpu.memory_space<vmem>>, %arg23: memref<4x8x8xbf16, #tpu.memory_space<vmem>>) attributes {dimension_semantics = [#tpu.dimension_semantics<parallel>, #tpu.dimension_semantics<arbitrary>], iteration_bounds = array<i64: 2, 1>, scalar_prefetch = 0 : i64, scratch_operands = 2 : i64, tpu.core_type = #tpu.core_type<tc>, window_params = [{transform_indices = @transform_0, window_bounds = array<i64: 1, 8, 32>}, {transform_indices = @transform_1, window_bounds = array<i64: 1, 8, 32>}, {transform_indices = @transform_2, window_bounds = array<i64: 1, 32, 8>}, {pipeline_mode = #tpu.pipeline_mode<synchronous>, transform_indices = @transform_3, window_bounds = array<i64: 4, 32, 8>}, {pipeline_mode = #tpu.pipeline_mode<synchronous>, transform_indices = @transform_4, window_bounds = array<i64: 4, 1, 8>}, {pipeline_mode = #tpu.pipeline_mode<synchronous>, transform_indices = @transform_5, window_bounds = array<i64: 4, 8, 32>}, {pipeline_mode = #tpu.pipeline_mode<synchronous>, transform_indices = @transform_6, window_bounds = array<i64: 4, 8, 1>}, {pipeline_mode = #tpu.pipeline_mode<synchronous>, transform_indices = @transform_7, window_bounds = array<i64: 4, 32, 8>}, {pipeline_mode = #tpu.pipeline_mode<synchronous>, transform_indices = @transform_8, window_bounds = array<i64: 4, 1, 8>}, {pipeline_mode = #tpu.pipeline_mode<synchronous>, transform_indices = @transform_9, window_bounds = array<i64: 4, 8, 32>}, {pipeline_mode = #tpu.pipeline_mode<synchronous>, transform_indices = @transform_10, window_bounds = array<i64: 1, 32>}, {pipeline_mode = #tpu.pipeline_mode<synchronous>, transform_indices = @transform_11, window_bounds = array<i64: 1, 32>}, {pipeline_mode = #tpu.pipeline_mode<synchronous>, transform_indices = @transform_12, window_bounds = array<i64: 1, 32>}, {pipeline_mode = #tpu.pipeline_mode<synchronous>, transform_indices = @transform_13, window_bounds = array<i64: 32, 32>}, {pipeline_mode = #tpu.pipeline_mode<synchronous>, transform_indices = @transform_14, window_bounds = array<i64: 1, 32>}, {pipeline_mode = #tpu.pipeline_mode<synchronous>, transform_indices = @transform_15, window_bounds = array<i64: 32, 32>}, {pipeline_mode = #tpu.pipeline_mode<synchronous>, transform_indices = @transform_16, window_bounds = array<i64: 1, 32>}, {pipeline_mode = #tpu.pipeline_mode<synchronous>, transform_indices = @transform_17, window_bounds = array<i64: 1, 32>}, {pipeline_mode = #tpu.pipeline_mode<synchronous>, transform_indices = @transform_18, window_bounds = array<i64: 1, 32>}, {transform_indices = @transform_19, window_bounds = array<i64: 1, 8, 32>}]} {
    %c0 = arith.constant 0 : index
    %c0_0 = arith.constant 0 : index
    %c0_1 = arith.constant 0 : index
    %0 = vector.load %arg2[%c0, %c0_0, %c0_1] : memref<1x8x32xf32, #tpu.memory_space<vmem>>, vector<1x8x32xf32>
    %1 = vector.shape_cast %0 : vector<1x8x32xf32> to vector<8x32xf32>
    %2 = arith.truncf %1 : vector<8x32xf32> to vector<8x32xbf16>
    %c0_i32 = arith.constant 0 : i32
    %3 = arith.cmpi eq, %arg1, %c0_i32 : i32
    %4 = arith.extui %3 : i1 to i32
    %c0_i32_2 = arith.constant 0 : i32
    %5 = arith.cmpi ne, %4, %c0_i32_2 : i32
    scf.if %5 {
      %c0_102 = arith.constant 0 : index
      %c0_103 = arith.constant 0 : index
      %c0_104 = arith.constant 0 : index
      %217 = vector.load %arg3[%c0_102, %c0_103, %c0_104] : memref<1x8x32xbf16, #tpu.memory_space<vmem>>, vector<1x8x32xbf16>
      %218 = vector.shape_cast %217 : vector<1x8x32xbf16> to vector<8x32xbf16>
      %c0_105 = arith.constant 0 : index
      %c0_106 = arith.constant 0 : index
      %c0_107 = arith.constant 0 : index
      %219 = vector.load %arg4[%c0_105, %c0_106, %c0_107] : memref<1x32x8xbf16, #tpu.memory_space<vmem>>, vector<1x32x8xbf16>
      %220 = vector.shape_cast %219 : vector<1x32x8xbf16> to vector<32x8xbf16>
      %c0_i32_108 = arith.constant 0 : i32
      %221 = arith.index_cast %c0_i32_108 : i32 to index
      %c0_109 = arith.constant 0 : index
      %c0_110 = arith.constant 0 : index
      %222 = vector.load %arg7[%221, %c0_109, %c0_110] : memref<4x8x32xbf16, #tpu.memory_space<vmem>>, vector<1x8x32xbf16>
      %223 = vector.shape_cast %222 : vector<1x8x32xbf16> to vector<8x32xbf16>
      %cst_111 = arith.constant dense<0.000000e+00> : vector<8x8xf32>
      %224 = tpu.matmul %223, %220, %cst_111 {dimension_numbers = #tpu.dot_dimension_numbers<[1], [0], [0], [1], [0, 0, 1, 1], [], []>} : vector<8x32xbf16>, vector<32x8xbf16>, vector<8x8xf32> -> vector<8x8xf32>
      %225 = arith.index_cast %c0_i32_108 : i32 to index
      %c0_112 = arith.constant 0 : index
      %c0_113 = arith.constant 0 : index
      %226 = vector.load %arg8[%225, %c0_112, %c0_113] : memref<4x8x1xf32, #tpu.memory_space<vmem>>, vector<1x8x1xf32>
      %227 = vector.shape_cast %226 : vector<1x8x1xf32> to vector<8x1xf32>
      %228 = vector.broadcast %227 : vector<8x1xf32> to vector<8x8xf32>
      %229 = arith.addf %224, %228 : vector<8x8xf32>
      %230 = arith.truncf %229 : vector<8x8xf32> to vector<8x8xbf16>
      %231 = arith.index_cast %c0_i32_108 : i32 to index
      %c0_114 = arith.constant 0 : index
      %c0_115 = arith.constant 0 : index
      %232 = vector.load %arg22[%231, %c0_114, %c0_115] : memref<4x8x8xbf16, #tpu.memory_space<vmem>>, vector<1x8x8xbf16>
      %233 = vector.shape_cast %232 : vector<1x8x8xbf16> to vector<8x8xbf16>
      %234 = vector.shape_cast %230 : vector<8x8xbf16> to vector<1x8x8xbf16>
      tpu.vector_store %arg22[%231, %c0_114, %c0_115], %234 {strides = array<i32>} : memref<4x8x8xbf16, #tpu.memory_space<vmem>>, vector<1x8x8xbf16>,
      %235 = arith.index_cast %c0_i32_108 : i32 to index
      %c0_116 = arith.constant 0 : index
      %c0_117 = arith.constant 0 : index
      %236 = vector.load %arg9[%235, %c0_116, %c0_117] : memref<4x32x8xbf16, #tpu.memory_space<vmem>>, vector<1x32x8xbf16>
      %237 = vector.shape_cast %236 : vector<1x32x8xbf16> to vector<32x8xbf16>
      %cst_118 = arith.constant dense<0.000000e+00> : vector<8x8xf32>
      %238 = tpu.matmul %218, %237, %cst_118 {dimension_numbers = #tpu.dot_dimension_numbers<[1], [0], [0], [1], [0, 0, 1, 1], [], []>} : vector<8x32xbf16>, vector<32x8xbf16>, vector<8x8xf32> -> vector<8x8xf32>
      %239 = arith.index_cast %c0_i32_108 : i32 to index
      %c0_119 = arith.constant 0 : index
      %c0_120 = arith.constant 0 : index
      %240 = vector.load %arg10[%239, %c0_119, %c0_120] : memref<4x1x8xf32, #tpu.memory_space<vmem>>, vector<1x1x8xf32>
      %241 = vector.shape_cast %240 : vector<1x1x8xf32> to vector<1x8xf32>
      %242 = vector.broadcast %241 : vector<1x8xf32> to vector<8x8xf32>
      %243 = arith.addf %238, %242 : vector<8x8xf32>
      %244 = arith.truncf %243 : vector<8x8xf32> to vector<8x8xbf16>
      %245 = arith.index_cast %c0_i32_108 : i32 to index
      %c0_121 = arith.constant 0 : index
      %c0_122 = arith.constant 0 : index
      %246 = vector.load %arg23[%245, %c0_121, %c0_122] : memref<4x8x8xbf16, #tpu.memory_space<vmem>>, vector<1x8x8xbf16>
      %247 = vector.shape_cast %246 : vector<1x8x8xbf16> to vector<8x8xbf16>
      %248 = vector.shape_cast %244 : vector<8x8xbf16> to vector<1x8x8xbf16>
      tpu.vector_store %arg23[%245, %c0_121, %c0_122], %248 {strides = array<i32>} : memref<4x8x8xbf16, #tpu.memory_space<vmem>>, vector<1x8x8xbf16>,
      %c1_i32_123 = arith.constant 1 : i32
      %249 = arith.index_cast %c1_i32_123 : i32 to index
      %c0_124 = arith.constant 0 : index
      %c0_125 = arith.constant 0 : index
      %250 = vector.load %arg7[%249, %c0_124, %c0_125] : memref<4x8x32xbf16, #tpu.memory_space<vmem>>, vector<1x8x32xbf16>
      %251 = vector.shape_cast %250 : vector<1x8x32xbf16> to vector<8x32xbf16>
      %cst_126 = arith.constant dense<0.000000e+00> : vector<8x8xf32>
      %252 = tpu.matmul %251, %220, %cst_126 {dimension_numbers = #tpu.dot_dimension_numbers<[1], [0], [0], [1], [0, 0, 1, 1], [], []>} : vector<8x32xbf16>, vector<32x8xbf16>, vector<8x8xf32> -> vector<8x8xf32>
      %253 = arith.index_cast %c1_i32_123 : i32 to index
      %c0_127 = arith.constant 0 : index
      %c0_128 = arith.constant 0 : index
      %254 = vector.load %arg8[%253, %c0_127, %c0_128] : memref<4x8x1xf32, #tpu.memory_space<vmem>>, vector<1x8x1xf32>
      %255 = vector.shape_cast %254 : vector<1x8x1xf32> to vector<8x1xf32>
      %256 = vector.broadcast %255 : vector<8x1xf32> to vector<8x8xf32>
      %257 = arith.addf %252, %256 : vector<8x8xf32>
      %258 = arith.truncf %257 : vector<8x8xf32> to vector<8x8xbf16>
      %259 = arith.index_cast %c1_i32_123 : i32 to index
      %c0_129 = arith.constant 0 : index
      %c0_130 = arith.constant 0 : index
      %260 = vector.load %arg22[%259, %c0_129, %c0_130] : memref<4x8x8xbf16, #tpu.memory_space<vmem>>, vector<1x8x8xbf16>
      %261 = vector.shape_cast %260 : vector<1x8x8xbf16> to vector<8x8xbf16>
      %262 = vector.shape_cast %258 : vector<8x8xbf16> to vector<1x8x8xbf16>
      tpu.vector_store %arg22[%259, %c0_129, %c0_130], %262 {strides = array<i32>} : memref<4x8x8xbf16, #tpu.memory_space<vmem>>, vector<1x8x8xbf16>,
      %263 = arith.index_cast %c1_i32_123 : i32 to index
      %c0_131 = arith.constant 0 : index
      %c0_132 = arith.constant 0 : index
      %264 = vector.load %arg9[%263, %c0_131, %c0_132] : memref<4x32x8xbf16, #tpu.memory_space<vmem>>, vector<1x32x8xbf16>
      %265 = vector.shape_cast %264 : vector<1x32x8xbf16> to vector<32x8xbf16>
      %cst_133 = arith.constant dense<0.000000e+00> : vector<8x8xf32>
      %266 = tpu.matmul %218, %265, %cst_133 {dimension_numbers = #tpu.dot_dimension_numbers<[1], [0], [0], [1], [0, 0, 1, 1], [], []>} : vector<8x32xbf16>, vector<32x8xbf16>, vector<8x8xf32> -> vector<8x8xf32>
      %267 = arith.index_cast %c1_i32_123 : i32 to index
      %c0_134 = arith.constant 0 : index
      %c0_135 = arith.constant 0 : index
      %268 = vector.load %arg10[%267, %c0_134, %c0_135] : memref<4x1x8xf32, #tpu.memory_space<vmem>>, vector<1x1x8xf32>
      %269 = vector.shape_cast %268 : vector<1x1x8xf32> to vector<1x8xf32>
      %270 = vector.broadcast %269 : vector<1x8xf32> to vector<8x8xf32>
      %271 = arith.addf %266, %270 : vector<8x8xf32>
      %272 = arith.truncf %271 : vector<8x8xf32> to vector<8x8xbf16>
      %273 = arith.index_cast %c1_i32_123 : i32 to index
      %c0_136 = arith.constant 0 : index
      %c0_137 = arith.constant 0 : index
      %274 = vector.load %arg23[%273, %c0_136, %c0_137] : memref<4x8x8xbf16, #tpu.memory_space<vmem>>, vector<1x8x8xbf16>
      %275 = vector.shape_cast %274 : vector<1x8x8xbf16> to vector<8x8xbf16>
      %276 = vector.shape_cast %272 : vector<8x8xbf16> to vector<1x8x8xbf16>
      tpu.vector_store %arg23[%273, %c0_136, %c0_137], %276 {strides = array<i32>} : memref<4x8x8xbf16, #tpu.memory_space<vmem>>, vector<1x8x8xbf16>,
      %c2_i32_138 = arith.constant 2 : i32
      %277 = arith.index_cast %c2_i32_138 : i32 to index
      %c0_139 = arith.constant 0 : index
      %c0_140 = arith.constant 0 : index
      %278 = vector.load %arg7[%277, %c0_139, %c0_140] : memref<4x8x32xbf16, #tpu.memory_space<vmem>>, vector<1x8x32xbf16>
      %279 = vector.shape_cast %278 : vector<1x8x32xbf16> to vector<8x32xbf16>
      %cst_141 = arith.constant dense<0.000000e+00> : vector<8x8xf32>
      %280 = tpu.matmul %279, %220, %cst_141 {dimension_numbers = #tpu.dot_dimension_numbers<[1], [0], [0], [1], [0, 0, 1, 1], [], []>} : vector<8x32xbf16>, vector<32x8xbf16>, vector<8x8xf32> -> vector<8x8xf32>
      %281 = arith.index_cast %c2_i32_138 : i32 to index
      %c0_142 = arith.constant 0 : index
      %c0_143 = arith.constant 0 : index
      %282 = vector.load %arg8[%281, %c0_142, %c0_143] : memref<4x8x1xf32, #tpu.memory_space<vmem>>, vector<1x8x1xf32>
      %283 = vector.shape_cast %282 : vector<1x8x1xf32> to vector<8x1xf32>
      %284 = vector.broadcast %283 : vector<8x1xf32> to vector<8x8xf32>
      %285 = arith.addf %280, %284 : vector<8x8xf32>
      %286 = arith.truncf %285 : vector<8x8xf32> to vector<8x8xbf16>
      %287 = arith.index_cast %c2_i32_138 : i32 to index
      %c0_144 = arith.constant 0 : index
      %c0_145 = arith.constant 0 : index
      %288 = vector.load %arg22[%287, %c0_144, %c0_145] : memref<4x8x8xbf16, #tpu.memory_space<vmem>>, vector<1x8x8xbf16>
      %289 = vector.shape_cast %288 : vector<1x8x8xbf16> to vector<8x8xbf16>
      %290 = vector.shape_cast %286 : vector<8x8xbf16> to vector<1x8x8xbf16>
      tpu.vector_store %arg22[%287, %c0_144, %c0_145], %290 {strides = array<i32>} : memref<4x8x8xbf16, #tpu.memory_space<vmem>>, vector<1x8x8xbf16>,
      %291 = arith.index_cast %c2_i32_138 : i32 to index
      %c0_146 = arith.constant 0 : index
      %c0_147 = arith.constant 0 : index
      %292 = vector.load %arg9[%291, %c0_146, %c0_147] : memref<4x32x8xbf16, #tpu.memory_space<vmem>>, vector<1x32x8xbf16>
      %293 = vector.shape_cast %292 : vector<1x32x8xbf16> to vector<32x8xbf16>
      %cst_148 = arith.constant dense<0.000000e+00> : vector<8x8xf32>
      %294 = tpu.matmul %218, %293, %cst_148 {dimension_numbers = #tpu.dot_dimension_numbers<[1], [0], [0], [1], [0, 0, 1, 1], [], []>} : vector<8x32xbf16>, vector<32x8xbf16>, vector<8x8xf32> -> vector<8x8xf32>
      %295 = arith.index_cast %c2_i32_138 : i32 to index
      %c0_149 = arith.constant 0 : index
      %c0_150 = arith.constant 0 : index
      %296 = vector.load %arg10[%295, %c0_149, %c0_150] : memref<4x1x8xf32, #tpu.memory_space<vmem>>, vector<1x1x8xf32>
      %297 = vector.shape_cast %296 : vector<1x1x8xf32> to vector<1x8xf32>
      %298 = vector.broadcast %297 : vector<1x8xf32> to vector<8x8xf32>
      %299 = arith.addf %294, %298 : vector<8x8xf32>
      %300 = arith.truncf %299 : vector<8x8xf32> to vector<8x8xbf16>
      %301 = arith.index_cast %c2_i32_138 : i32 to index
      %c0_151 = arith.constant 0 : index
      %c0_152 = arith.constant 0 : index
      %302 = vector.load %arg23[%301, %c0_151, %c0_152] : memref<4x8x8xbf16, #tpu.memory_space<vmem>>, vector<1x8x8xbf16>
      %303 = vector.shape_cast %302 : vector<1x8x8xbf16> to vector<8x8xbf16>
      %304 = vector.shape_cast %300 : vector<8x8xbf16> to vector<1x8x8xbf16>
      tpu.vector_store %arg23[%301, %c0_151, %c0_152], %304 {strides = array<i32>} : memref<4x8x8xbf16, #tpu.memory_space<vmem>>, vector<1x8x8xbf16>,
      %c3_i32_153 = arith.constant 3 : i32
      %305 = arith.index_cast %c3_i32_153 : i32 to index
      %c0_154 = arith.constant 0 : index
      %c0_155 = arith.constant 0 : index
      %306 = vector.load %arg7[%305, %c0_154, %c0_155] : memref<4x8x32xbf16, #tpu.memory_space<vmem>>, vector<1x8x32xbf16>
      %307 = vector.shape_cast %306 : vector<1x8x32xbf16> to vector<8x32xbf16>
      %cst_156 = arith.constant dense<0.000000e+00> : vector<8x8xf32>
      %308 = tpu.matmul %307, %220, %cst_156 {dimension_numbers = #tpu.dot_dimension_numbers<[1], [0], [0], [1], [0, 0, 1, 1], [], []>} : vector<8x32xbf16>, vector<32x8xbf16>, vector<8x8xf32> -> vector<8x8xf32>
      %309 = arith.index_cast %c3_i32_153 : i32 to index
      %c0_157 = arith.constant 0 : index
      %c0_158 = arith.constant 0 : index
      %310 = vector.load %arg8[%309, %c0_157, %c0_158] : memref<4x8x1xf32, #tpu.memory_space<vmem>>, vector<1x8x1xf32>
      %311 = vector.shape_cast %310 : vector<1x8x1xf32> to vector<8x1xf32>
      %312 = vector.broadcast %311 : vector<8x1xf32> to vector<8x8xf32>
      %313 = arith.addf %308, %312 : vector<8x8xf32>
      %314 = arith.truncf %313 : vector<8x8xf32> to vector<8x8xbf16>
      %315 = arith.index_cast %c3_i32_153 : i32 to index
      %c0_159 = arith.constant 0 : index
      %c0_160 = arith.constant 0 : index
      %316 = vector.load %arg22[%315, %c0_159, %c0_160] : memref<4x8x8xbf16, #tpu.memory_space<vmem>>, vector<1x8x8xbf16>
      %317 = vector.shape_cast %316 : vector<1x8x8xbf16> to vector<8x8xbf16>
      %318 = vector.shape_cast %314 : vector<8x8xbf16> to vector<1x8x8xbf16>
      tpu.vector_store %arg22[%315, %c0_159, %c0_160], %318 {strides = array<i32>} : memref<4x8x8xbf16, #tpu.memory_space<vmem>>, vector<1x8x8xbf16>,
      %319 = arith.index_cast %c3_i32_153 : i32 to index
      %c0_161 = arith.constant 0 : index
      %c0_162 = arith.constant 0 : index
      %320 = vector.load %arg9[%319, %c0_161, %c0_162] : memref<4x32x8xbf16, #tpu.memory_space<vmem>>, vector<1x32x8xbf16>
      %321 = vector.shape_cast %320 : vector<1x32x8xbf16> to vector<32x8xbf16>
      %cst_163 = arith.constant dense<0.000000e+00> : vector<8x8xf32>
      %322 = tpu.matmul %218, %321, %cst_163 {dimension_numbers = #tpu.dot_dimension_numbers<[1], [0], [0], [1], [0, 0, 1, 1], [], []>} : vector<8x32xbf16>, vector<32x8xbf16>, vector<8x8xf32> -> vector<8x8xf32>
      %323 = arith.index_cast %c3_i32_153 : i32 to index
      %c0_164 = arith.constant 0 : index
      %c0_165 = arith.constant 0 : index
      %324 = vector.load %arg10[%323, %c0_164, %c0_165] : memref<4x1x8xf32, #tpu.memory_space<vmem>>, vector<1x1x8xf32>
      %325 = vector.shape_cast %324 : vector<1x1x8xf32> to vector<1x8xf32>
      %326 = vector.broadcast %325 : vector<1x8xf32> to vector<8x8xf32>
      %327 = arith.addf %322, %326 : vector<8x8xf32>
      %328 = arith.truncf %327 : vector<8x8xf32> to vector<8x8xbf16>
      %329 = arith.index_cast %c3_i32_153 : i32 to index
      %c0_166 = arith.constant 0 : index
      %c0_167 = arith.constant 0 : index
      %330 = vector.load %arg23[%329, %c0_166, %c0_167] : memref<4x8x8xbf16, #tpu.memory_space<vmem>>, vector<1x8x8xbf16>
      %331 = vector.shape_cast %330 : vector<1x8x8xbf16> to vector<8x8xbf16>
      %332 = vector.shape_cast %328 : vector<8x8xbf16> to vector<1x8x8xbf16>
      tpu.vector_store %arg23[%329, %c0_166, %c0_167], %332 {strides = array<i32>} : memref<4x8x8xbf16, #tpu.memory_space<vmem>>, vector<1x8x8xbf16>,
      %c4_i32_168 = arith.constant 4 : i32
    } else {
    }
    %cst = arith.constant 0.000000e+00 : f32
    %6 = vector.broadcast %cst : f32 to vector<8x32xf32>
    %c0_i32_3 = arith.constant 0 : i32
    %7 = arith.index_cast %c0_i32_3 : i32 to index
    %c0_4 = arith.constant 0 : index
    %c0_5 = arith.constant 0 : index
    %8 = vector.load %arg5[%7, %c0_4, %c0_5] : memref<4x32x8xbf16, #tpu.memory_space<vmem>>, vector<1x32x8xbf16>
    %9 = vector.shape_cast %8 : vector<1x32x8xbf16> to vector<32x8xbf16>
    %cst_6 = arith.constant dense<0.000000e+00> : vector<8x8xf32>
    %10 = tpu.matmul %2, %9, %cst_6 {dimension_numbers = #tpu.dot_dimension_numbers<[1], [0], [0], [1], [0, 0, 1, 1], [], []>} : vector<8x32xbf16>, vector<32x8xbf16>, vector<8x8xf32> -> vector<8x8xf32>
    %11 = arith.index_cast %c0_i32_3 : i32 to index
    %c0_7 = arith.constant 0 : index
    %c0_8 = arith.constant 0 : index
    %12 = vector.load %arg6[%11, %c0_7, %c0_8] : memref<4x1x8xf32, #tpu.memory_space<vmem>>, vector<1x1x8xf32>
    %13 = vector.shape_cast %12 : vector<1x1x8xf32> to vector<1x8xf32>
    %14 = vector.broadcast %13 : vector<1x8xf32> to vector<8x8xf32>
    %15 = arith.addf %10, %14 : vector<8x8xf32>
    %16 = arith.truncf %15 : vector<8x8xf32> to vector<8x8xbf16>
    %17 = arith.index_cast %c0_i32_3 : i32 to index
    %c0_9 = arith.constant 0 : index
    %c0_10 = arith.constant 0 : index
    %18 = vector.load %arg22[%17, %c0_9, %c0_10] : memref<4x8x8xbf16, #tpu.memory_space<vmem>>, vector<1x8x8xbf16>
    %19 = vector.shape_cast %18 : vector<1x8x8xbf16> to vector<8x8xbf16>
    %cst_11 = arith.constant dense<0.000000e+00> : vector<8x8xf32>
    %20 = tpu.matmul %16, %19, %cst_11 {dimension_numbers = #tpu.dot_dimension_numbers<[1], [0], [0], [1], [0, 0, 1, 1], [], []>} : vector<8x8xbf16>, vector<8x8xbf16>, vector<8x8xf32> -> vector<8x8xf32>
    %cst_12 = arith.constant dense<0xFF800000> : vector<8xf32>
    %21 = vector.multi_reduction <maximumf>, %20, %cst_12 [1] : vector<8x8xf32> to vector<8xf32>
    %22 = vector.shape_cast %21 : vector<8xf32> to vector<8x1xf32>
    %23 = vector.broadcast %22 : vector<8x1xf32> to vector<8x8xf32>
    %24 = arith.subf %20, %23 : vector<8x8xf32>
    %25 = math.exp %24 : vector<8x8xf32>
    %cst_13 = arith.constant dense<0.000000e+00> : vector<8xf32>
    %26 = vector.multi_reduction <add>, %25, %cst_13 [1] : vector<8x8xf32> to vector<8xf32>
    %27 = vector.shape_cast %26 : vector<8xf32> to vector<8x1xf32>
    %28 = tpu.reciprocal %27 {approx = true} : vector<8x1xf32> -> vector<8x1xf32>
    %29 = arith.truncf %25 : vector<8x8xf32> to vector<8x8xbf16>
    %30 = arith.index_cast %c0_i32_3 : i32 to index
    %c0_14 = arith.constant 0 : index
    %c0_15 = arith.constant 0 : index
    %31 = vector.load %arg23[%30, %c0_14, %c0_15] : memref<4x8x8xbf16, #tpu.memory_space<vmem>>, vector<1x8x8xbf16>
    %32 = vector.shape_cast %31 : vector<1x8x8xbf16> to vector<8x8xbf16>
    %cst_16 = arith.constant dense<0.000000e+00> : vector<8x8xf32>
    %33 = tpu.matmul %29, %32, %cst_16 {dimension_numbers = #tpu.dot_dimension_numbers<[1], [0], [0], [1], [0, 0, 1, 1], [], []>} : vector<8x8xbf16>, vector<8x8xbf16>, vector<8x8xf32> -> vector<8x8xf32>
    %34 = vector.broadcast %28 : vector<8x1xf32> to vector<8x8xf32>
    %35 = arith.mulf %33, %34 : vector<8x8xf32>
    %36 = arith.truncf %35 : vector<8x8xf32> to vector<8x8xbf16>
    %37 = arith.index_cast %c0_i32_3 : i32 to index
    %c0_17 = arith.constant 0 : index
    %c0_18 = arith.constant 0 : index
    %38 = vector.load %arg11[%37, %c0_17, %c0_18] : memref<4x8x32xbf16, #tpu.memory_space<vmem>>, vector<1x8x32xbf16>
    %39 = vector.shape_cast %38 : vector<1x8x32xbf16> to vector<8x32xbf16>
    %cst_19 = arith.constant dense<0.000000e+00> : vector<8x32xf32>
    %40 = tpu.matmul %36, %39, %cst_19 {dimension_numbers = #tpu.dot_dimension_numbers<[1], [0], [0], [1], [0, 0, 1, 1], [], []>} : vector<8x8xbf16>, vector<8x32xbf16>, vector<8x32xf32> -> vector<8x32xf32>
    %41 = arith.addf %6, %40 : vector<8x32xf32>
    %c1_i32 = arith.constant 1 : i32
    %42 = arith.index_cast %c1_i32 : i32 to index
    %c0_20 = arith.constant 0 : index
    %c0_21 = arith.constant 0 : index
    %43 = vector.load %arg5[%42, %c0_20, %c0_21] : memref<4x32x8xbf16, #tpu.memory_space<vmem>>, vector<1x32x8xbf16>
    %44 = vector.shape_cast %43 : vector<1x32x8xbf16> to vector<32x8xbf16>
    %cst_22 = arith.constant dense<0.000000e+00> : vector<8x8xf32>
    %45 = tpu.matmul %2, %44, %cst_22 {dimension_numbers = #tpu.dot_dimension_numbers<[1], [0], [0], [1], [0, 0, 1, 1], [], []>} : vector<8x32xbf16>, vector<32x8xbf16>, vector<8x8xf32> -> vector<8x8xf32>
    %46 = arith.index_cast %c1_i32 : i32 to index
    %c0_23 = arith.constant 0 : index
    %c0_24 = arith.constant 0 : index
    %47 = vector.load %arg6[%46, %c0_23, %c0_24] : memref<4x1x8xf32, #tpu.memory_space<vmem>>, vector<1x1x8xf32>
    %48 = vector.shape_cast %47 : vector<1x1x8xf32> to vector<1x8xf32>
    %49 = vector.broadcast %48 : vector<1x8xf32> to vector<8x8xf32>
    %50 = arith.addf %45, %49 : vector<8x8xf32>
    %51 = arith.truncf %50 : vector<8x8xf32> to vector<8x8xbf16>
    %52 = arith.index_cast %c1_i32 : i32 to index
    %c0_25 = arith.constant 0 : index
    %c0_26 = arith.constant 0 : index
    %53 = vector.load %arg22[%52, %c0_25, %c0_26] : memref<4x8x8xbf16, #tpu.memory_space<vmem>>, vector<1x8x8xbf16>
    %54 = vector.shape_cast %53 : vector<1x8x8xbf16> to vector<8x8xbf16>
    %cst_27 = arith.constant dense<0.000000e+00> : vector<8x8xf32>
    %55 = tpu.matmul %51, %54, %cst_27 {dimension_numbers = #tpu.dot_dimension_numbers<[1], [0], [0], [1], [0, 0, 1, 1], [], []>} : vector<8x8xbf16>, vector<8x8xbf16>, vector<8x8xf32> -> vector<8x8xf32>
    %cst_28 = arith.constant dense<0xFF800000> : vector<8xf32>
    %56 = vector.multi_reduction <maximumf>, %55, %cst_28 [1] : vector<8x8xf32> to vector<8xf32>
    %57 = vector.shape_cast %56 : vector<8xf32> to vector<8x1xf32>
    %58 = vector.broadcast %57 : vector<8x1xf32> to vector<8x8xf32>
    %59 = arith.subf %55, %58 : vector<8x8xf32>
    %60 = math.exp %59 : vector<8x8xf32>
    %cst_29 = arith.constant dense<0.000000e+00> : vector<8xf32>
    %61 = vector.multi_reduction <add>, %60, %cst_29 [1] : vector<8x8xf32> to vector<8xf32>
    %62 = vector.shape_cast %61 : vector<8xf32> to vector<8x1xf32>
    %63 = tpu.reciprocal %62 {approx = true} : vector<8x1xf32> -> vector<8x1xf32>
    %64 = arith.truncf %60 : vector<8x8xf32> to vector<8x8xbf16>
    %65 = arith.index_cast %c1_i32 : i32 to index
    %c0_30 = arith.constant 0 : index
    %c0_31 = arith.constant 0 : index
    %66 = vector.load %arg23[%65, %c0_30, %c0_31] : memref<4x8x8xbf16, #tpu.memory_space<vmem>>, vector<1x8x8xbf16>
    %67 = vector.shape_cast %66 : vector<1x8x8xbf16> to vector<8x8xbf16>
    %cst_32 = arith.constant dense<0.000000e+00> : vector<8x8xf32>
    %68 = tpu.matmul %64, %67, %cst_32 {dimension_numbers = #tpu.dot_dimension_numbers<[1], [0], [0], [1], [0, 0, 1, 1], [], []>} : vector<8x8xbf16>, vector<8x8xbf16>, vector<8x8xf32> -> vector<8x8xf32>
    %69 = vector.broadcast %63 : vector<8x1xf32> to vector<8x8xf32>
    %70 = arith.mulf %68, %69 : vector<8x8xf32>
    %71 = arith.truncf %70 : vector<8x8xf32> to vector<8x8xbf16>
    %72 = arith.index_cast %c1_i32 : i32 to index
    %c0_33 = arith.constant 0 : index
    %c0_34 = arith.constant 0 : index
    %73 = vector.load %arg11[%72, %c0_33, %c0_34] : memref<4x8x32xbf16, #tpu.memory_space<vmem>>, vector<1x8x32xbf16>
    %74 = vector.shape_cast %73 : vector<1x8x32xbf16> to vector<8x32xbf16>
    %cst_35 = arith.constant dense<0.000000e+00> : vector<8x32xf32>
    %75 = tpu.matmul %71, %74, %cst_35 {dimension_numbers = #tpu.dot_dimension_numbers<[1], [0], [0], [1], [0, 0, 1, 1], [], []>} : vector<8x8xbf16>, vector<8x32xbf16>, vector<8x32xf32> -> vector<8x32xf32>
    %76 = arith.addf %41, %75 : vector<8x32xf32>
    %c2_i32 = arith.constant 2 : i32
    %77 = arith.index_cast %c2_i32 : i32 to index
    %c0_36 = arith.constant 0 : index
    %c0_37 = arith.constant 0 : index
    %78 = vector.load %arg5[%77, %c0_36, %c0_37] : memref<4x32x8xbf16, #tpu.memory_space<vmem>>, vector<1x32x8xbf16>
    %79 = vector.shape_cast %78 : vector<1x32x8xbf16> to vector<32x8xbf16>
    %cst_38 = arith.constant dense<0.000000e+00> : vector<8x8xf32>
    %80 = tpu.matmul %2, %79, %cst_38 {dimension_numbers = #tpu.dot_dimension_numbers<[1], [0], [0], [1], [0, 0, 1, 1], [], []>} : vector<8x32xbf16>, vector<32x8xbf16>, vector<8x8xf32> -> vector<8x8xf32>
    %81 = arith.index_cast %c2_i32 : i32 to index
    %c0_39 = arith.constant 0 : index
    %c0_40 = arith.constant 0 : index
    %82 = vector.load %arg6[%81, %c0_39, %c0_40] : memref<4x1x8xf32, #tpu.memory_space<vmem>>, vector<1x1x8xf32>
    %83 = vector.shape_cast %82 : vector<1x1x8xf32> to vector<1x8xf32>
    %84 = vector.broadcast %83 : vector<1x8xf32> to vector<8x8xf32>
    %85 = arith.addf %80, %84 : vector<8x8xf32>
    %86 = arith.truncf %85 : vector<8x8xf32> to vector<8x8xbf16>
    %87 = arith.index_cast %c2_i32 : i32 to index
    %c0_41 = arith.constant 0 : index
    %c0_42 = arith.constant 0 : index
    %88 = vector.load %arg22[%87, %c0_41, %c0_42] : memref<4x8x8xbf16, #tpu.memory_space<vmem>>, vector<1x8x8xbf16>
    %89 = vector.shape_cast %88 : vector<1x8x8xbf16> to vector<8x8xbf16>
    %cst_43 = arith.constant dense<0.000000e+00> : vector<8x8xf32>
    %90 = tpu.matmul %86, %89, %cst_43 {dimension_numbers = #tpu.dot_dimension_numbers<[1], [0], [0], [1], [0, 0, 1, 1], [], []>} : vector<8x8xbf16>, vector<8x8xbf16>, vector<8x8xf32> -> vector<8x8xf32>
    %cst_44 = arith.constant dense<0xFF800000> : vector<8xf32>
    %91 = vector.multi_reduction <maximumf>, %90, %cst_44 [1] : vector<8x8xf32> to vector<8xf32>
    %92 = vector.shape_cast %91 : vector<8xf32> to vector<8x1xf32>
    %93 = vector.broadcast %92 : vector<8x1xf32> to vector<8x8xf32>
    %94 = arith.subf %90, %93 : vector<8x8xf32>
    %95 = math.exp %94 : vector<8x8xf32>
    %cst_45 = arith.constant dense<0.000000e+00> : vector<8xf32>
    %96 = vector.multi_reduction <add>, %95, %cst_45 [1] : vector<8x8xf32> to vector<8xf32>
    %97 = vector.shape_cast %96 : vector<8xf32> to vector<8x1xf32>
    %98 = tpu.reciprocal %97 {approx = true} : vector<8x1xf32> -> vector<8x1xf32>
    %99 = arith.truncf %95 : vector<8x8xf32> to vector<8x8xbf16>
    %100 = arith.index_cast %c2_i32 : i32 to index
    %c0_46 = arith.constant 0 : index
    %c0_47 = arith.constant 0 : index
    %101 = vector.load %arg23[%100, %c0_46, %c0_47] : memref<4x8x8xbf16, #tpu.memory_space<vmem>>, vector<1x8x8xbf16>
    %102 = vector.shape_cast %101 : vector<1x8x8xbf16> to vector<8x8xbf16>
    %cst_48 = arith.constant dense<0.000000e+00> : vector<8x8xf32>
    %103 = tpu.matmul %99, %102, %cst_48 {dimension_numbers = #tpu.dot_dimension_numbers<[1], [0], [0], [1], [0, 0, 1, 1], [], []>} : vector<8x8xbf16>, vector<8x8xbf16>, vector<8x8xf32> -> vector<8x8xf32>
    %104 = vector.broadcast %98 : vector<8x1xf32> to vector<8x8xf32>
    %105 = arith.mulf %103, %104 : vector<8x8xf32>
    %106 = arith.truncf %105 : vector<8x8xf32> to vector<8x8xbf16>
    %107 = arith.index_cast %c2_i32 : i32 to index
    %c0_49 = arith.constant 0 : index
    %c0_50 = arith.constant 0 : index
    %108 = vector.load %arg11[%107, %c0_49, %c0_50] : memref<4x8x32xbf16, #tpu.memory_space<vmem>>, vector<1x8x32xbf16>
    %109 = vector.shape_cast %108 : vector<1x8x32xbf16> to vector<8x32xbf16>
    %cst_51 = arith.constant dense<0.000000e+00> : vector<8x32xf32>
    %110 = tpu.matmul %106, %109, %cst_51 {dimension_numbers = #tpu.dot_dimension_numbers<[1], [0], [0], [1], [0, 0, 1, 1], [], []>} : vector<8x8xbf16>, vector<8x32xbf16>, vector<8x32xf32> -> vector<8x32xf32>
    %111 = arith.addf %76, %110 : vector<8x32xf32>
    %c3_i32 = arith.constant 3 : i32
    %112 = arith.index_cast %c3_i32 : i32 to index
    %c0_52 = arith.constant 0 : index
    %c0_53 = arith.constant 0 : index
    %113 = vector.load %arg5[%112, %c0_52, %c0_53] : memref<4x32x8xbf16, #tpu.memory_space<vmem>>, vector<1x32x8xbf16>
    %114 = vector.shape_cast %113 : vector<1x32x8xbf16> to vector<32x8xbf16>
    %cst_54 = arith.constant dense<0.000000e+00> : vector<8x8xf32>
    %115 = tpu.matmul %2, %114, %cst_54 {dimension_numbers = #tpu.dot_dimension_numbers<[1], [0], [0], [1], [0, 0, 1, 1], [], []>} : vector<8x32xbf16>, vector<32x8xbf16>, vector<8x8xf32> -> vector<8x8xf32>
    %116 = arith.index_cast %c3_i32 : i32 to index
    %c0_55 = arith.constant 0 : index
    %c0_56 = arith.constant 0 : index
    %117 = vector.load %arg6[%116, %c0_55, %c0_56] : memref<4x1x8xf32, #tpu.memory_space<vmem>>, vector<1x1x8xf32>
    %118 = vector.shape_cast %117 : vector<1x1x8xf32> to vector<1x8xf32>
    %119 = vector.broadcast %118 : vector<1x8xf32> to vector<8x8xf32>
    %120 = arith.addf %115, %119 : vector<8x8xf32>
    %121 = arith.truncf %120 : vector<8x8xf32> to vector<8x8xbf16>
    %122 = arith.index_cast %c3_i32 : i32 to index
    %c0_57 = arith.constant 0 : index
    %c0_58 = arith.constant 0 : index
    %123 = vector.load %arg22[%122, %c0_57, %c0_58] : memref<4x8x8xbf16, #tpu.memory_space<vmem>>, vector<1x8x8xbf16>
    %124 = vector.shape_cast %123 : vector<1x8x8xbf16> to vector<8x8xbf16>
    %cst_59 = arith.constant dense<0.000000e+00> : vector<8x8xf32>
    %125 = tpu.matmul %121, %124, %cst_59 {dimension_numbers = #tpu.dot_dimension_numbers<[1], [0], [0], [1], [0, 0, 1, 1], [], []>} : vector<8x8xbf16>, vector<8x8xbf16>, vector<8x8xf32> -> vector<8x8xf32>
    %cst_60 = arith.constant dense<0xFF800000> : vector<8xf32>
    %126 = vector.multi_reduction <maximumf>, %125, %cst_60 [1] : vector<8x8xf32> to vector<8xf32>
    %127 = vector.shape_cast %126 : vector<8xf32> to vector<8x1xf32>
    %128 = vector.broadcast %127 : vector<8x1xf32> to vector<8x8xf32>
    %129 = arith.subf %125, %128 : vector<8x8xf32>
    %130 = math.exp %129 : vector<8x8xf32>
    %cst_61 = arith.constant dense<0.000000e+00> : vector<8xf32>
    %131 = vector.multi_reduction <add>, %130, %cst_61 [1] : vector<8x8xf32> to vector<8xf32>
    %132 = vector.shape_cast %131 : vector<8xf32> to vector<8x1xf32>
    %133 = tpu.reciprocal %132 {approx = true} : vector<8x1xf32> -> vector<8x1xf32>
    %134 = arith.truncf %130 : vector<8x8xf32> to vector<8x8xbf16>
    %135 = arith.index_cast %c3_i32 : i32 to index
    %c0_62 = arith.constant 0 : index
    %c0_63 = arith.constant 0 : index
    %136 = vector.load %arg23[%135, %c0_62, %c0_63] : memref<4x8x8xbf16, #tpu.memory_space<vmem>>, vector<1x8x8xbf16>
    %137 = vector.shape_cast %136 : vector<1x8x8xbf16> to vector<8x8xbf16>
    %cst_64 = arith.constant dense<0.000000e+00> : vector<8x8xf32>
    %138 = tpu.matmul %134, %137, %cst_64 {dimension_numbers = #tpu.dot_dimension_numbers<[1], [0], [0], [1], [0, 0, 1, 1], [], []>} : vector<8x8xbf16>, vector<8x8xbf16>, vector<8x8xf32> -> vector<8x8xf32>
    %139 = vector.broadcast %133 : vector<8x1xf32> to vector<8x8xf32>
    %140 = arith.mulf %138, %139 : vector<8x8xf32>
    %141 = arith.truncf %140 : vector<8x8xf32> to vector<8x8xbf16>
    %142 = arith.index_cast %c3_i32 : i32 to index
    %c0_65 = arith.constant 0 : index
    %c0_66 = arith.constant 0 : index
    %143 = vector.load %arg11[%142, %c0_65, %c0_66] : memref<4x8x32xbf16, #tpu.memory_space<vmem>>, vector<1x8x32xbf16>
    %144 = vector.shape_cast %143 : vector<1x8x32xbf16> to vector<8x32xbf16>
    %cst_67 = arith.constant dense<0.000000e+00> : vector<8x32xf32>
    %145 = tpu.matmul %141, %144, %cst_67 {dimension_numbers = #tpu.dot_dimension_numbers<[1], [0], [0], [1], [0, 0, 1, 1], [], []>} : vector<8x8xbf16>, vector<8x32xbf16>, vector<8x32xf32> -> vector<8x32xf32>
    %146 = arith.addf %111, %145 : vector<8x32xf32>
    %c4_i32 = arith.constant 4 : i32
    %c0_68 = arith.constant 0 : index
    %c0_69 = arith.constant 0 : index
    %147 = vector.load %arg12[%c0_68, %c0_69] : memref<1x32xf32, #tpu.memory_space<vmem>>, vector<1x32xf32>
    %148 = vector.broadcast %147 : vector<1x32xf32> to vector<8x32xf32>
    %149 = arith.addf %146, %148 : vector<8x32xf32>
    %150 = arith.addf %149, %1 : vector<8x32xf32>
    %c0_70 = arith.constant 0 : index
    %c0_71 = arith.constant 0 : index
    %151 = vector.load %arg13[%c0_70, %c0_71] : memref<1x32xf32, #tpu.memory_space<vmem>>, vector<1x32xf32>
    %c0_72 = arith.constant 0 : index
    %c0_73 = arith.constant 0 : index
    %152 = vector.load %arg14[%c0_72, %c0_73] : memref<1x32xf32, #tpu.memory_space<vmem>>, vector<1x32xf32>
    %cst_74 = arith.constant dense<0.000000e+00> : vector<8xf32>
    %153 = vector.multi_reduction <add>, %150, %cst_74 [1] : vector<8x32xf32> to vector<8xf32>
    %154 = vector.shape_cast %153 : vector<8xf32> to vector<8x1xf32>
    %cst_75 = arith.constant 3.200000e+01 : f32
    %155 = vector.broadcast %cst_75 : f32 to vector<8x1xf32>
    %156 = arith.divf %154, %155 : vector<8x1xf32>
    %157 = vector.broadcast %156 : vector<8x1xf32> to vector<8x32xf32>
    %158 = arith.subf %150, %157 : vector<8x32xf32>
    %159 = arith.mulf %158, %158 : vector<8x32xf32>
    %cst_76 = arith.constant dense<0.000000e+00> : vector<8xf32>
    %160 = vector.multi_reduction <add>, %159, %cst_76 [1] : vector<8x32xf32> to vector<8xf32>
    %161 = vector.shape_cast %160 : vector<8xf32> to vector<8x1xf32>
    %cst_77 = arith.constant 3.200000e+01 : f32
    %162 = vector.broadcast %cst_77 : f32 to vector<8x1xf32>
    %163 = arith.divf %161, %162 : vector<8x1xf32>
    %164 = vector.broadcast %156 : vector<8x1xf32> to vector<8x32xf32>
    %165 = arith.subf %150, %164 : vector<8x32xf32>
    %cst_78 = arith.constant 9.99999974E-6 : f32
    %166 = vector.broadcast %cst_78 : f32 to vector<8x1xf32>
    %167 = arith.addf %163, %166 : vector<8x1xf32>
    %168 = math.rsqrt %167 : vector<8x1xf32>
    %169 = vector.broadcast %168 : vector<8x1xf32> to vector<8x32xf32>
    %170 = arith.mulf %165, %169 : vector<8x32xf32>
    %171 = vector.broadcast %151 : vector<1x32xf32> to vector<8x32xf32>
    %172 = arith.mulf %170, %171 : vector<8x32xf32>
    %173 = vector.broadcast %152 : vector<1x32xf32> to vector<8x32xf32>
    %174 = arith.addf %172, %173 : vector<8x32xf32>
    %175 = arith.truncf %174 : vector<8x32xf32> to vector<8x32xbf16>
    %c0_79 = arith.constant 0 : index
    %c0_80 = arith.constant 0 : index
    %176 = vector.load %arg15[%c0_79, %c0_80] : memref<32x32xbf16, #tpu.memory_space<vmem>>, vector<32x32xbf16>
    %cst_81 = arith.constant dense<0.000000e+00> : vector<8x32xf32>
    %177 = tpu.matmul %175, %176, %cst_81 {dimension_numbers = #tpu.dot_dimension_numbers<[1], [0], [0], [1], [0, 0, 1, 1], [], []>} : vector<8x32xbf16>, vector<32x32xbf16>, vector<8x32xf32> -> vector<8x32xf32>
    %c0_82 = arith.constant 0 : index
    %c0_83 = arith.constant 0 : index
    %178 = vector.load %arg16[%c0_82, %c0_83] : memref<1x32xf32, #tpu.memory_space<vmem>>, vector<1x32xf32>
    %179 = vector.broadcast %178 : vector<1x32xf32> to vector<8x32xf32>
    %180 = arith.addf %177, %179 : vector<8x32xf32>
    %cst_84 = arith.constant 0.000000e+00 : f32
    %181 = vector.broadcast %cst_84 : f32 to vector<8x32xf32>
    %182 = arith.maximumf %180, %181 : vector<8x32xf32>
    %183 = arith.truncf %182 : vector<8x32xf32> to vector<8x32xbf16>
    %c0_85 = arith.constant 0 : index
    %c0_86 = arith.constant 0 : index
    %184 = vector.load %arg17[%c0_85, %c0_86] : memref<32x32xbf16, #tpu.memory_space<vmem>>, vector<32x32xbf16>
    %cst_87 = arith.constant dense<0.000000e+00> : vector<8x32xf32>
    %185 = tpu.matmul %183, %184, %cst_87 {dimension_numbers = #tpu.dot_dimension_numbers<[1], [0], [0], [1], [0, 0, 1, 1], [], []>} : vector<8x32xbf16>, vector<32x32xbf16>, vector<8x32xf32> -> vector<8x32xf32>
    %c0_88 = arith.constant 0 : index
    %c0_89 = arith.constant 0 : index
    %186 = vector.load %arg18[%c0_88, %c0_89] : memref<1x32xf32, #tpu.memory_space<vmem>>, vector<1x32xf32>
    %187 = vector.broadcast %186 : vector<1x32xf32> to vector<8x32xf32>
    %188 = arith.addf %185, %187 : vector<8x32xf32>
    %189 = arith.addf %149, %188 : vector<8x32xf32>
    %c0_90 = arith.constant 0 : index
    %c0_91 = arith.constant 0 : index
    %190 = vector.load %arg19[%c0_90, %c0_91] : memref<1x32xf32, #tpu.memory_space<vmem>>, vector<1x32xf32>
    %c0_92 = arith.constant 0 : index
    %c0_93 = arith.constant 0 : index
    %191 = vector.load %arg20[%c0_92, %c0_93] : memref<1x32xf32, #tpu.memory_space<vmem>>, vector<1x32xf32>
    %cst_94 = arith.constant dense<0.000000e+00> : vector<8xf32>
    %192 = vector.multi_reduction <add>, %189, %cst_94 [1] : vector<8x32xf32> to vector<8xf32>
    %193 = vector.shape_cast %192 : vector<8xf32> to vector<8x1xf32>
    %cst_95 = arith.constant 3.200000e+01 : f32
    %194 = vector.broadcast %cst_95 : f32 to vector<8x1xf32>
    %195 = arith.divf %193, %194 : vector<8x1xf32>
    %196 = vector.broadcast %195 : vector<8x1xf32> to vector<8x32xf32>
    %197 = arith.subf %189, %196 : vector<8x32xf32>
    %198 = arith.mulf %197, %197 : vector<8x32xf32>
    %cst_96 = arith.constant dense<0.000000e+00> : vector<8xf32>
    %199 = vector.multi_reduction <add>, %198, %cst_96 [1] : vector<8x32xf32> to vector<8xf32>
    %200 = vector.shape_cast %199 : vector<8xf32> to vector<8x1xf32>
    %cst_97 = arith.constant 3.200000e+01 : f32
    %201 = vector.broadcast %cst_97 : f32 to vector<8x1xf32>
    %202 = arith.divf %200, %201 : vector<8x1xf32>
    %203 = vector.broadcast %195 : vector<8x1xf32> to vector<8x32xf32>
    %204 = arith.subf %189, %203 : vector<8x32xf32>
    %cst_98 = arith.constant 9.99999974E-6 : f32
    %205 = vector.broadcast %cst_98 : f32 to vector<8x1xf32>
    %206 = arith.addf %202, %205 : vector<8x1xf32>
    %207 = math.rsqrt %206 : vector<8x1xf32>
    %208 = vector.broadcast %207 : vector<8x1xf32> to vector<8x32xf32>
    %209 = arith.mulf %204, %208 : vector<8x32xf32>
    %210 = vector.broadcast %190 : vector<1x32xf32> to vector<8x32xf32>
    %211 = arith.mulf %209, %210 : vector<8x32xf32>
    %212 = vector.broadcast %191 : vector<1x32xf32> to vector<8x32xf32>
    %213 = arith.addf %211, %212 : vector<8x32xf32>
    %c0_99 = arith.constant 0 : index
    %c0_100 = arith.constant 0 : index
    %c0_101 = arith.constant 0 : index
    %214 = vector.load %arg21[%c0_99, %c0_100, %c0_101] : memref<1x8x32xf32, #tpu.memory_space<vmem>>, vector<1x8x32xf32>
    %215 = vector.shape_cast %214 : vector<1x8x32xf32> to vector<8x32xf32>
    %216 = vector.shape_cast %213 : vector<8x32xf32> to vector<1x8x32xf32>
    tpu.vector_store %arg21[%c0_99, %c0_100, %c0_101], %216 {strides = array<i32>} : memref<1x8x32xf32, #tpu.memory_space<vmem>>, vector<1x8x32xf32>,
    return
  }
  func.func @transform_0(%arg0: i32, %arg1: i32) -> (i32, i32, i32) {
    %c0_i32 = arith.constant 0 : i32
    %c0_i32_0 = arith.constant 0 : i32
    return %arg0, %arg1, %c0_i32 : i32, i32, i32
  }
  func.func @transform_1(%arg0: i32, %arg1: i32) -> (i32, i32, i32) {
    %c0_i32 = arith.constant 0 : i32
    %c0_i32_0 = arith.constant 0 : i32
    %c0_i32_1 = arith.constant 0 : i32
    return %arg0, %c0_i32, %c0_i32_0 : i32, i32, i32
  }
  func.func @transform_2(%arg0: i32, %arg1: i32) -> (i32, i32, i32) {
    %c0_i32 = arith.constant 0 : i32
    %c0_i32_0 = arith.constant 0 : i32
    %c0_i32_1 = arith.constant 0 : i32
    return %arg0, %c0_i32, %c0_i32_0 : i32, i32, i32
  }
  func.func @transform_3(%arg0: i32, %arg1: i32) -> (i32, i32, i32) {
    %c0_i32 = arith.constant 0 : i32
    %c0_i32_0 = arith.constant 0 : i32
    %c0_i32_1 = arith.constant 0 : i32
    %c0_i32_2 = arith.constant 0 : i32
    return %c0_i32, %c0_i32_0, %c0_i32_1 : i32, i32, i32
  }
  func.func @transform_4(%arg0: i32, %arg1: i32) -> (i32, i32, i32) {
    %c0_i32 = arith.constant 0 : i32
    %c0_i32_0 = arith.constant 0 : i32
    %c0_i32_1 = arith.constant 0 : i32
    %c0_i32_2 = arith.constant 0 : i32
    return %c0_i32, %c0_i32_0, %c0_i32_1 : i32, i32, i32
  }
  func.func @transform_5(%arg0: i32, %arg1: i32) -> (i32, i32, i32) {
    %c0_i32 = arith.constant 0 : i32
    %c0_i32_0 = arith.constant 0 : i32
    %c0_i32_1 = arith.constant 0 : i32
    %c0_i32_2 = arith.constant 0 : i32
    return %c0_i32, %c0_i32_0, %c0_i32_1 : i32, i32, i32
  }
  func.func @transform_6(%arg0: i32, %arg1: i32) -> (i32, i32, i32) {
    %c0_i32 = arith.constant 0 : i32
    %c0_i32_0 = arith.constant 0 : i32
    %c0_i32_1 = arith.constant 0 : i32
    %c0_i32_2 = arith.constant 0 : i32
    return %c0_i32, %c0_i32_0, %c0_i32_1 : i32, i32, i32
  }
  func.func @transform_7(%arg0: i32, %arg1: i32) -> (i32, i32, i32) {
    %c0_i32 = arith.constant 0 : i32
    %c0_i32_0 = arith.constant 0 : i32
    %c0_i32_1 = arith.constant 0 : i32
    %c0_i32_2 = arith.constant 0 : i32
    return %c0_i32, %c0_i32_0, %c0_i32_1 : i32, i32, i32
  }
  func.func @transform_8(%arg0: i32, %arg1: i32) -> (i32, i32, i32) {
    %c0_i32 = arith.constant 0 : i32
    %c0_i32_0 = arith.constant 0 : i32
    %c0_i32_1 = arith.constant 0 : i32
    %c0_i32_2 = arith.constant 0 : i32
    return %c0_i32, %c0_i32_0, %c0_i32_1 : i32, i32, i32
  }
  func.func @transform_9(%arg0: i32, %arg1: i32) -> (i32, i32, i32) {
    %c0_i32 = arith.constant 0 : i32
    %c0_i32_0 = arith.constant 0 : i32
    %c0_i32_1 = arith.constant 0 : i32
    %c0_i32_2 = arith.constant 0 : i32
    return %c0_i32, %c0_i32_0, %c0_i32_1 : i32, i32, i32
  }
  func.func @transform_10(%arg0: i32, %arg1: i32) -> (i32, i32) {
    %c0_i32 = arith.constant 0 : i32
    %c0_i32_0 = arith.constant 0 : i32
    %c0_i32_1 = arith.constant 0 : i32
    return %c0_i32, %c0_i32_0 : i32, i32
  }
  func.func @transform_11(%arg0: i32, %arg1: i32) -> (i32, i32) {
    %c0_i32 = arith.constant 0 : i32
    %c0_i32_0 = arith.constant 0 : i32
    %c0_i32_1 = arith.constant 0 : i32
    return %c0_i32, %c0_i32_0 : i32, i32
  }
  func.func @transform_12(%arg0: i32, %arg1: i32) -> (i32, i32) {
    %c0_i32 = arith.constant 0 : i32
    %c0_i32_0 = arith.constant 0 : i32
    %c0_i32_1 = arith.constant 0 : i32
    return %c0_i32, %c0_i32_0 : i32, i32
  }
  func.func @transform_13(%arg0: i32, %arg1: i32) -> (i32, i32) {
    %c0_i32 = arith.constant 0 : i32
    %c0_i32_0 = arith.constant 0 : i32
    %c0_i32_1 = arith.constant 0 : i32
    return %c0_i32, %c0_i32_0 : i32, i32
  }
  func.func @transform_14(%arg0: i32, %arg1: i32) -> (i32, i32) {
    %c0_i32 = arith.constant 0 : i32
    %c0_i32_0 = arith.constant 0 : i32
    %c0_i32_1 = arith.constant 0 : i32
    return %c0_i32, %c0_i32_0 : i32, i32
  }
  func.func @transform_15(%arg0: i32, %arg1: i32) -> (i32, i32) {
    %c0_i32 = arith.constant 0 : i32
    %c0_i32_0 = arith.constant 0 : i32
    %c0_i32_1 = arith.constant 0 : i32
    return %c0_i32, %c0_i32_0 : i32, i32
  }
  func.func @transform_16(%arg0: i32, %arg1: i32) -> (i32, i32) {
    %c0_i32 = arith.constant 0 : i32
    %c0_i32_0 = arith.constant 0 : i32
    %c0_i32_1 = arith.constant 0 : i32
    return %c0_i32, %c0_i32_0 : i32, i32
  }
  func.func @transform_17(%arg0: i32, %arg1: i32) -> (i32, i32) {
    %c0_i32 = arith.constant 0 : i32
    %c0_i32_0 = arith.constant 0 : i32
    %c0_i32_1 = arith.constant 0 : i32
    return %c0_i32, %c0_i32_0 : i32, i32
  }
  func.func @transform_18(%arg0: i32, %arg1: i32) -> (i32, i32) {
    %c0_i32 = arith.constant 0 : i32
    %c0_i32_0 = arith.constant 0 : i32
    %c0_i32_1 = arith.constant 0 : i32
    return %c0_i32, %c0_i32_0 : i32, i32
  }
  func.func @transform_19(%arg0: i32, %arg1: i32) -> (i32, i32, i32) {
    %c0_i32 = arith.constant 0 : i32
    %c0_i32_0 = arith.constant 0 : i32
    return %arg0, %arg1, %c0_i32 : i32, i32, i32
  }
}

</mosaic_0001>

<bundles_post_ra>
// kernel: tpu_custom_call.1
= control target key start
LH: loop header
LB: loop body
LE: loop exit
PB: predicated region body
PF: predicated region fallthrough
CT: control target
= control target key end

     0   :  { %s2455_s0 = inlined_call_operand.vmem [shape: f32[2,8,32], index: 0, kind: input, shape index: {}]   ;;  %s2456_s1 = inlined_call_operand.vmem [shape: bf16[2,8,32], index: 1, kind: input, shape index: {}]   ;;  %s2457_s2 = inlined_call_operand.vmem [shape: bf16[2,32,8], index: 2, kind: input, shape index: {}]   ;;  %s2458_s3 = inlined_call_operand.vmem [shape: bf16[4,32,8], index: 3, kind: input, shape index: {}]   ;;  %s2459_s4 = inlined_call_operand.vmem [shape: f32[4,1,8], index: 4, kind: input, shape index: {}]   ;;  %s2460_s5 = inlined_call_operand.vmem [shape: bf16[4,8,32], index: 5, kind: input, shape index: {}]   ;;  %s2461_s6 = inlined_call_operand.vmem [shape: f32[4,8,1], index: 6, kind: input, shape index: {}]   ;;  %s2462_s7 = inlined_call_operand.vmem [shape: bf16[4,32,8], index: 7, kind: input, shape index: {}]   ;;  %s2463_s8 = inlined_call_operand.vmem [shape: f32[4,1,8], index: 8, kind: input, shape index: {}]   ;;  %s2464_s9 = inlined_call_operand.vmem [shape: bf16[4,8,32], index: 9, kind: input, shape index: {}]   ;;  %s2465_s10 = inlined_call_operand.vmem [shape: f32[1,32], index: 10, kind: input, shape index: {}]   ;;  %s2466_s11 = inlined_call_operand.vmem [shape: f32[1,32], index: 11, kind: input, shape index: {}]   ;;  %s2467_s12 = inlined_call_operand.vmem [shape: f32[1,32], index: 12, kind: input, shape index: {}]   ;;  %s2468_s13 = inlined_call_operand.vmem [shape: bf16[32,32], index: 13, kind: input, shape index: {}]   ;;  %s2469_s14 = inlined_call_operand.vmem [shape: f32[1,32], index: 14, kind: input, shape index: {}]   ;;  %s2470_s15 = inlined_call_operand.vmem [shape: bf16[32,32], index: 15, kind: input, shape index: {}]   ;;  %s2471_s16 = inlined_call_operand.vmem [shape: f32[1,32], index: 16, kind: input, shape index: {}]   ;;  %s2472_s17 = inlined_call_operand.vmem [shape: f32[1,32], index: 17, kind: input, shape index: {}]   ;;  %s2473_s18 = inlined_call_operand.vmem [shape: f32[1,32], index: 18, kind: input, shape index: {}]   ;;  %s2474_s19 = inlined_call_operand.hbm [shape: f32[2,8,32], index: 19, kind: output, shape index: {}]  }
   0x1   :  { %2486 = sst [smem:[#allocation15_spill]] %s2455_s0 }
   0x2   :  { %2487 = sst [smem:[#allocation16_spill]] %s2456_s1 }
   0x3   :  { %2488 = sst [smem:[#allocation17_spill]] %s2457_s2 }
   0x4   :  { %2489 = sst [smem:[#allocation18_spill]] %s2458_s3 }
   0x5   :  { %2490 = sst [smem:[#allocation19_spill]] %s2459_s4 }
   0x6   :  { %2491 = sst [smem:[#allocation20_spill]] %s2473_s18 }
   0x7   :  { %2492 = sst [smem:[#allocation21_spill]] %s2474_s19 }
   0x8   :  { %24 = vsyncpa [#allocation5], 0 }
   0x9   :  { %26 = vsyncpa [#allocation5 + $0x1], 0  ;;  %s2133_s0 = smov 0   ;;  %s2135_s30 = smov 0  }
   0xa   :  { %s2137_s20 = smov 0   ;;  %s2139_s21 = smov 0  }
   0xb   :  { %s2141_s1 = smov 0   ;;  %s2143_s22 = smov 0  }
   0xc LB: > { %2493 = sst [smem:[#allocation7_spill]] %s2009_s0  ;;  %s1664_s2 = sadd.s32 4294967295, %s2029_s22   ;;  %s2029_s22 = sphi %s2143_s22, %s32_s22   ;;  %s2025_s1 = sphi %s2141_s1, %s2518_s1   ;;  %s2021_s21 = sphi %s2139_s21, %s2517_s21   ;;  %s2017_s20 = sphi %s2137_s20, %s2516_s20   ;;  %s2013_s30 = sphi %s2135_s30, %s2520_s30   ;;  %s2009_s0 = sphi %s2133_s0, %s2519_s0  }
   0xd   : > { %2494 = sst [smem:[#allocation8_spill]] %s2017_s20  ;;  %s1665_s23 = sadd.s32 4294967294, %s2029_s22  }
   0xe   : > { %2495 = sst [smem:[#allocation9_spill]] %s2025_s1  ;;  %s44_s24 = sadd.s32 1, %s2025_s1 }
   0xf   : > { %2496 = sst [smem:[#allocation10_spill]] %s2029_s22  ;;  %s469_s25 = sadd.s32 1, %s2017_s20 }
  0x10   : > { %p46_p0 = scmp.ge.s32.totalorder %s44_s24, 2  ;;  %p479_p1 = scmp.ne.s32.totalorder %s2017_s20, %s2013_s30 }
  0x11   : > { %p480_p2 = scmp.eq.s32.totalorder %s1664_s2, 1  ;;  %p485_p3 = scmp.ne.s32.totalorder %s2013_s30, %s2009_s0 }
  0x12   : > { %s2522_s24 = smov (%p46_p0, %s44_s24), 0  ;;  %p486_p5 = scmp.eq.s32.totalorder %s1665_s23, 1 }
  0x13   : > { %2497 = sst [smem:[#allocation11_spill]] %s2522_s24  ;;  %p2173_p4 = por %p480_p2, %p479_p1 }
  0x14   : > { %s464_s26 = ssub.s32 %s2025_s1, %s2522_s24  ;;  %p1668_p6 = scmp.ge.s32.totalorder %s2029_s22, 1 }
  0x15   : > { %s2498_s3 = scalar_select %p2173_p4, 1, 0 }
  0x16   : > { %p467_p7 = scmp.eq.s32.totalorder %s464_s26, 0  ;;  %p2180_p8 = por %p486_p5, %p485_p3 }
  0x17   : > { %2499 = sst [smem:[#allocation12_spill]] %s2498_s3  ;;  %p577_p9 = scmp.lt.s32.totalorder %s2029_s22, 3 }
  0x18   : > { %s2500_s27 = scalar_select %p2180_p8, 1, 0 }
  0x19   : > { %s2186_s28 = scalar_select %p467_p7, %s2017_s20, %s469_s25  }
  0x1a   : > { %2501 = sst [smem:[#allocation13_spill]] %s2500_s27  ;;  %p578_p10 = pnand %p1668_p6, %p577_p9 }
  0x1b   : > { %2502 = sst [smem:[#allocation14_spill]] %s2186_s28  ;;  %p644_p11 = scmp.lt.s32.totalorder (!%p578_p10), %s2021_s21, 1 }
  0x1c   : > { %581 = sbr.rel (%p578_p10) target bundleno = 1841 (0x731), region = 96  ;;  %s2503_s27 = sld [smem:[#allocation17_spill]] (!%p578_p10) }
  0x1d   : > { %s2504_s22 = sld [smem:[#allocation16_spill]] (!%p578_p10)  ;;  %s641_s20 = sand.u32 (!%p578_p10), 1, %s2013_s30  }
  0x1e   : > { %s2508_s4 = sld [smem:[#allocation19_spill]] (!%p578_p10)  ;;  %s1828_s19 = sshll.u32 (!%p578_p10), %s2021_s21, 3 }
  0x1f   : > { %s2511_s2 = sld [smem:[#allocation20_spill]] (!%p578_p10) }
  0x21   : > { %v1837_v0 = vld [vmem:[%s2462_s7 + $0x18] sm:$0xff]  ;;  %v1693_v1 = vld [vmem:[%s2461_s6 + $0x8] sm:$0xff]  ;;  %v1836_v2 = vld [vmem:[%s2462_s7 + $0x10] sm:$0xff]  ;;  %s2199_s25 = scalar_select %p644_p11, %s2021_s21, 1  ;;  %v2031_v3 = vmov 0   ;;  %vm691_vm0 = vcmask 261120  }
  0x22   : > { %805 = vmatpush.bf16.msra.mxu3 %v1837_v0  ;;  %1911 = vset.pattern.permute.xlu0 %v2031_v3  ;;  %v1841_v4 = vld [vmem:[%s2462_s7 + $0x38] sm:$0xff]  ;;  %v1840_v5 = vld [vmem:[%s2462_s7 + $0x30] sm:$0xff]  ;;  %v673_v8 = vld [vmem:[%s2461_s6] sm:$0xff]  ;;  %vm709_vm1 = vcmask 60416   ;;  %vm990_vm2 = vcmask 1043456   ;;  %vm986_vm3 = vcmask 64512  }
  0x23   : > { %755 = vperm.xlu0 %1911, %v1693_v1   ;;  %1913 = vset.pattern.permute.xlu2 %v2031_v3  ;;  %s1831_s28 = sshll.u32 %s2199_s25, 4  ;;  %s1671_s24 = sshll.u32 %s2199_s25, 2  ;;  %v672_v11 = vld [vmem:[%s2460_s5] sm:$0xf]  ;;  %v1692_v12 = vld [vmem:[%s2460_s5 + $0x4] sm:$0xf] }
  0x24   : > { %1912 = vset.pattern.permute.xlu1 %v2031_v3  ;;  %s659_s1 = scalar_lea.vmem %s2503_s27, %s1831_s28  ;;  %s654_s18 = scalar_lea.vmem %s2504_s22, %s1671_s24  ;;  %v1835_v15 = vld [vmem:[%s2462_s7 + $0x8] sm:$0xff]  ;;  %v1834_v20 = vld [vmem:[%s2462_s7] sm:$0xff]  ;;  %v1727_v36 = vld [vmem:[%s2461_s6 + $0x18] sm:$0xff] }
  0x25   : > { %v1833_v6 = vld [vmem:[%s659_s1 + $0x8] sm:$0xff]  ;;  %v667_v7 = vld [vmem:[%s654_s18] sm:$0xf]  ;;  %s2505_s22 = sld [smem:[#allocation18_spill]]  ;;  %740 = vmatpush.bf16.msra.mxu1 %v1835_v15  ;;  %s1670_s18 = sshll.u32 %s2199_s25, 3  ;;  %887 = vperm.xlu2 %1913, %v1727_v36  }
  0x26   : > { %806 = vmatpush.bf16.msra.mxu3 %v1836_v2  ;;  %701 = vmatpush.bf16.msra.mxu0 %v1833_v6  ;;  %v1832_v9 = vld [vmem:[%s659_s1] sm:$0xff]  ;;  %v1709_v17 = vld [vmem:[%s2460_s5 + $0x8] sm:$0xf]  ;;  %s2507_s24 = sld [smem:[#allocation15_spill]] }
  0x27   : > { %767 = vmatpush.bf16.msra.mxu2 %v1833_v6  ;;  %v1839_v21 = vld [vmem:[%s2462_s7 + $0x28] sm:$0xff]  ;;  %v1838_v22 = vld [vmem:[%s2462_s7 + $0x20] sm:$0xff] }
  0x28   : > { %v1914_v24 = vld [vmem:[%s2463_s8 + $0x1] ss:$0 sm:$0xff]  ;;  %v1915_v41 = vld [vmem:[%s2463_s8 + $0x3] ss:$0 sm:$0xff]  ;;  %v1916_v52 = vld [vmem:[%s2508_s4] ss:$0 sm:$0xff] }
  0x29   : > { %1708 = vmatmul.msk.bf16.vlgmr.msra.gmra.mxu3 %vm691_vm0, %v667_v7  ;;  %741 = vmatpush.bf16.msra.mxu1 %v1834_v20  ;;  %v1917_v53 = vld [vmem:[%s2508_s4 + $0x1] ss:$0 sm:$0xff]  ;;  %v1918_v62 = vld [vmem:[%s2463_s8] ss:$0 sm:$0xff]  ;;  %v1919_v3 = vld [vmem:[%s2463_s8 + $0x2] ss:$0 sm:$0xff] }
  0x2a   : > { %937 = vmatpush.bf16.msrb.mxu3 %v1841_v4  ;;  %702 = vmatpush.bf16.msra.mxu0 %v1832_v9 }
  0x2b   : > { %s2506_s27 = smov %s2505_s22  ;;  %v1845_v10 = vld [vmem:[%s2505_s22 + $0x18] sm:$0xff]  ;;  %676 = vperm.xlu0 %1911, %v673_v8   ;;  %768 = vmatpush.bf16.msra.mxu2 %v1832_v9  ;;  %v1726_v8 = vld [vmem:[%s2460_s5 + $0xc] sm:$0xf]  ;;  %s1669_s22 = sshll.u32 %s641_s20, 3 }
  0x2c   : > { %v1844_v13 = vld [vmem:[%s2506_s27 + $0x10] sm:$0xff]  ;;  %v1843_v14 = vld [vmem:[%s2506_s27 + $0x8] sm:$0xff]  ;;  %v1842_v16 = vld [vmem:[%s2506_s27] sm:$0xff]  ;;  %s650_s23 = scalar_lea.vmem %s2507_s24, %s1670_s18  ;;  %1691 = vmatmul.msk.bf16.vlgmr.msra.gmra.mxu1 %vm691_vm0, %v667_v7  ;;  %s643_s0 = scalar_lea.vmem [#allocation4], %s1669_s22 }
  0x2d   : > { %1682 = vmatmul.msk.bf16.vlgmr.msra.gmra.mxu0 %vm691_vm0, %v672_v11  ;;  %v2251_v18 = vld [vmem:[%s650_s23] sm:$0xff]  ;;  %871 = vmatpush.bf16.msrb.mxu1 %v1839_v21  ;;  %v1849_v11 = vld [vmem:[%s2506_s27 + $0x38] sm:$0xff]  ;;  %v1710_v21 = vld [vmem:[%s2461_s6 + $0x10] sm:$0xff]  ;;  %s2509_s23 = sld [smem:[#allocation21_spill]]  ;;  %s1566_s21 = sshll.u32 %s643_s0, 4  ;;  %s1567_s21 = int_to_ptr.vmem [resolvable:$true] %s1566_s21 }
  0x2e   : > { %938 = vmatpush.bf16.msrb.mxu3 %v1840_v5  ;;  %833 = vmatpush.bf16.msrb.mxu0 %v1833_v6  ;;  %v2255_v19 = vpack.c.bf16 %v2251_v18, %v2251_v18  ;;  %s1553_s18 = scalar_lea.sflag [#allocation5], %s641_s20 }
  0x2f   : > { %899 = vmatpush.bf16.msrb.mxu2 %v1833_v6 }
  0x30   : > { %1694 = vmatmul.msk.bf16.vlgmr.msra.gmra.mxu2 %vm691_vm0, %v1692_v12  ;;  %v1848_v12 = vld [vmem:[%s2506_s27 + $0x30] sm:$0xff] }
  0x31   : > { %872 = vmatpush.bf16.msrb.mxu1 %v1838_v22 }
  0x32   : > { %1069 = vmatpush.bf16.msra.mxu3 %v1845_v10  ;;  %834 = vmatpush.bf16.msrb.mxu0 %v1832_v9  ;;  %v1846_v10 = vld [vmem:[%s2506_s27 + $0x20] sm:$0xff] }
  0x33   : > { %900 = vmatpush.bf16.msrb.mxu2 %v1832_v9  ;;  %v1847_v9 = vld [vmem:[%s2506_s27 + $0x28] sm:$0xff]  ;;  %s1564_s1 = scalar_lea.hbm %s2509_s23, %s1828_s19  ;;  %s1971_s22 = scalar_lea.hbm %s2509_s23, 16 }
  0x36   : > { %1070 = vmatpush.bf16.msra.mxu3 %v1844_v13  ;;  %977 = vmatpush.bf16.msra.mxu0 %v1843_v14 }
  0x39   : > { %1742 = vmatmul.msk.bf16.vlgmr.msrb.gmra.mxu3 %vm691_vm0, %v667_v7 }
  0x3a   : > { %978 = vmatpush.bf16.msra.mxu0 %v1842_v16 }
  0x3c   : > { %1725 = vmatmul.msk.bf16.vlgmr.msrb.gmra.mxu1 %vm691_vm0, %v667_v7 }
  0x3d   : > { %1711 = vmatmul.msk.bf16.vlgmr.msrb.gmra.mxu0 %vm691_vm0, %v1709_v17 }
  0x40   : > { %1728 = vmatmul.msk.bf16.vlgmr.msrb.gmra.mxu2 %vm691_vm0, %v1726_v8 }
  0x49   : > { %1767 = vmatmul.msk.bf16.vlgmr.msra.gmra.mxu3 %vm691_vm0, %v2255_v19 }
  0x4d   : > { %1751 = vmatmul.msk.bf16.vlgmr.msra.gmra.mxu0 %vm691_vm0, %v2255_v19 }
  0x95   : > { %v756_v23 = vpop.permute.xlu0 %755 }
  0x9d   : > { %v677_v25 = vpop.permute.xlu0 %676 }
  0xa9   : > { %v743_v63 = vpop.f32.mrf.mxu1 }
  0xaa   : > { %v704_v26 = vpop.f32.mrf.mxu0  ;;  %v744_v0 = vadd.f32 %v1918_v62, %v743_v63 }
  0xab   : > { %v705_v28 = vadd.f32 %v704_v26, %v677_v25 }
  0xac   : > { %v808_v27 = vpop.f32.mrf.mxu3  ;;  %v747_v1 = vpack.c.bf16 %v744_v0, %v744_v0 }
  0xad   : > { %v809_v29 = vadd.f32 %v1914_v24, %v808_v27  ;;  %v708_v30 = vpack.c.bf16 %v705_v28, %v705_v28  ;;  %v888_v24 = vpop.permute.xlu2 %887 }
  0xae   : > { %748 = vst.msk [vmem:[#allocation3] sm:$0xf] %vm709_vm1, %v747_v1 }
  0xaf   : > { %v812_v31 = vpack.c.bf16 %v809_v29, %v809_v29  ;;  %710 = vst.msk [vmem:[#allocation2] sm:$0xf] %vm709_vm1, %v708_v30 }
  0xb1   : > { %814 = vst.msk [vmem:[#allocation3 + $0x4] sm:$0xf] %vm709_vm1, %v812_v31  ;;  %v745_v2 = vpop.f32.mrf.mxu1 }
  0xb2   : > { %v706_v34 = vpop.f32.mrf.mxu0 }
  0xb3   : > { %v770_v32 = vpop.f32.mrf.mxu2 }
  0xb4   : > { %v771_v33 = vadd.f32 %v770_v32, %v756_v23  ;;  %v810_v35 = vpop.f32.mrf.mxu3 }
  0xb5   : > { %v1018_v22 = vld [vmem:[#allocation3] sm:$0xf] }
  0xb6   : > { %v774_v37 = vpack.c.bf16 %v771_v33, %v771_v33  ;;  %v985_v38 = vld [vmem:[#allocation2] sm:$0xf]  ;;  %v1023_v23 = vsel %vm990_vm2, %v1018_v22, 0 }
  0xb7   : > { %v992_v39 = vsel %vm990_vm2, %v985_v38, 0  ;;  %1032 = vmatpush.bf16.msra.mxu2 %v1023_v23 }
  0xb8   : > { %776 = vst.msk [vmem:[#allocation2 + $0x4] sm:$0xf] %vm709_vm1, %v774_v37  ;;  %v1110_v40 = vld [vmem:[#allocation3 + $0x4] sm:$0xf]  ;;  %1001 = vmatpush.bf16.msra.mxu1 %v992_v39 }
  0xb9   : > { %v1115_v42 = vsel %vm990_vm2, %v1110_v40, 0  ;;  %v874_v4 = vpop.f32.mrf.mxu1 }
  0xba   : > { %v2286_v44 = vpop.f32.mrf.mxu0  ;;  %v875_v5 = vadd.f32 %v1919_v3, %v874_v4 }
  0xbb   : > { %v772_v43 = vpop.f32.mrf.mxu2 }
  0xbc   : > { %1124 = vmatpush.bf16.msrb.mxu1 %v1115_v42  ;;  %v940_v45 = vpop.f32.mrf.mxu3  ;;  %v878_v6 = vpack.c.bf16 %v875_v5, %v875_v5 }
  0xbd   : > { %v941_v46 = vadd.f32 %v1915_v41, %v940_v45 }
  0xbe   : > { %880 = vst.msk [vmem:[#allocation3 + $0x8] sm:$0xf] %vm709_vm1, %v878_v6 }
  0xbf   : > { %v1078_v47 = vld [vmem:[#allocation2 + $0x4] sm:$0xf]  ;;  %v944_v48 = vpack.c.bf16 %v941_v46, %v941_v46 }
  0xc0   : > { %v1083_v49 = vsel %vm990_vm2, %v1078_v47, 0  ;;  %v1920_v47 = vld [vmem:[%s2508_s4 + $0x2] ss:$0 sm:$0xff] }
  0xc1   : > { %1092 = vmatpush.bf16.msrb.mxu0 %v1083_v49  ;;  %946 = vst.msk [vmem:[#allocation3 + $0xc] sm:$0xf] %vm709_vm1, %v944_v48  ;;  %v876_v7 = vpop.f32.mrf.mxu1 }
  0xc2   : > { %v838_v50 = vpop.f32.mrf.mxu0 }
  0xc3   : > { %v902_v25 = vpop.f32.mrf.mxu2 }
  0xc4   : > { %v942_v51 = vpop.f32.mrf.mxu3  ;;  %v903_v27 = vadd.f32 %v902_v25, %v888_v24 }
  0xc5   : > { %1200 = vmatpush.bf16.msra.mxu0 %v1847_v9 }
  0xc6   : > { %v906_v30 = vpack.c.bf16 %v903_v27, %v903_v27 }
  0xc8   : > { %908 = vst.msk [vmem:[#allocation2 + $0xc] sm:$0xf] %vm709_vm1, %v906_v30  ;;  %v1354_v0 = vld [vmem:[#allocation3 + $0xc] sm:$0xf] }
  0xc9   : > { %1201 = vmatpush.bf16.msra.mxu0 %v1846_v10  ;;  %v1359_v2 = vsel %vm990_vm2, %v1354_v0, 0 }
  0xca   : > { %v980_v54 = vpop.f32.mrf.mxu0 }
  0xcb   : > { %v981_v56 = vadd.f32 %v1916_v52, %v980_v54  ;;  %v904_v34 = vpop.f32.mrf.mxu2 }
  0xcc   : > { %v1072_v55 = vpop.f32.mrf.mxu3  ;;  %v1789_v34 = vld [vmem:[%s2464_s9 + $0x8] sm:$0xf] }
  0xcd   : > { %v1073_v57 = vadd.f32 %v1917_v53, %v1072_v55  ;;  %v984_v58 = vpack.c.bf16 %v981_v56, %v981_v56  ;;  %v1770_v56 = vld [vmem:[%s2464_s9 + $0x4] sm:$0xf] }
  0xcf   : > { %v1076_v59 = vpack.c.bf16 %v1073_v57, %v1073_v57  ;;  %1752 = vmatmul.msk.bf16.vlgmr.msra.gmra.mxu1 %vm986_vm3, %v984_v58  ;;  %v1322_v49 = vld [vmem:[#allocation2 + $0xc] sm:$0xf]  ;;  %v1138_v57 = vsel %vm990_vm2, %v1770_v56, 0  ;;  %v1241_v58 = vld [vmem:[#allocation3 + $0x8] sm:$0xf] }
  0xd0   : > { %v1327_v51 = vsel %vm990_vm2, %v1322_v49, 0  ;;  %1147 = vmatpush.bf16.msrb.mxu2 %v1138_v57  ;;  %v1922_v56 = vld [vmem:[%s2465_s10] ss:$0 sm:$0xff] }
  0xd1   : > { %1768 = vmatmul.msk.bf16.vlgmr.msrb.gmra.mxu0 %vm986_vm3, %v1076_v59  ;;  %v1246_v59 = vsel %vm990_vm2, %v1241_v58, 0 }
  0xd2   : > { %v982_v61 = vpop.f32.mrf.mxu0  ;;  %1313 = vmatpush.bf16.msrb.mxu0 %v1849_v11 }
  0xd4   : > { %v1074_v60 = vpop.f32.mrf.mxu3 }
  0xd6   : > { %1314 = vmatpush.bf16.msrb.mxu0 %v1848_v12 }
  0xe1   : > { %1786 = vmatmul.msk.bf16.vlgmr.msra.gmra.mxu0 %vm691_vm0, %v2255_v19 }
  0xf1   : > { %1804 = vmatmul.msk.bf16.vlgmr.msrb.gmra.mxu0 %vm691_vm0, %v2255_v19 }
 0x14c   : > { %v1003_v13 = vpop.f32.mrf.mxu1 }
 0x14d   : > { %v1007_v16 = vsel %vm986_vm3, %v1003_v13, -inf }
 0x14e   : > { %v1094_v14 = vpop.f32.mrf.mxu0  ;;  %1008 = vmax.xlane.f32.xlu2 %v1007_v16  ;;  %v1040_v16 = vld [vmem:[%s2464_s9] sm:$0xf] }
 0x14f   : > { %v1098_v15 = vsel %vm986_vm3, %v1094_v14, -inf }
 0x150   : > { %1099 = vmax.xlane.f32.xlu1 %v1098_v15 }
 0x154   : > { %v1005_v20 = vpop.f32.mrf.mxu1 }
 0x155   : > { %v1157_v20 = vsel %vm990_vm2, %v1040_v16, 0 }
 0x156   : > { %v1096_v17 = vpop.f32.mrf.mxu0  ;;  %1166 = vmatpush.bf16.msrb.mxu3 %v1157_v20 }
 0x15e   : > { %v1203_v26 = vpop.f32.mrf.mxu0 }
 0x15f   : > { %v1204_v48 = vadd.f32 %v1920_v47, %v1203_v26 }
 0x161   : > { %v1207_v52 = vpack.c.bf16 %v1204_v48, %v1204_v48 }
 0x166   : > { %v1205_v35 = vpop.f32.mrf.mxu0 }
 0x167   : > { %v1269_v35 = vsel %vm990_vm2, %v1789_v34, 0 }
 0x168   : > { %1278 = vmatpush.bf16.msra.mxu3 %v1269_v35 }
 0x169   : > { %821 = vperm.xlu1 %1912, %v1710_v21  }
 0x16e   : > { %v1316_v41 = vpop.f32.mrf.mxu0 }
 0x176   : > { %v1318_v42 = vpop.f32.mrf.mxu0 }
 0x1c1   : > { %v1009_v29 = vpop.xlane.xlu2 %1008 }
 0x1c2   : > { %v1010_v19 = vsub.f32 %v1003_v13, %v1009_v29 }
 0x1c3   : > { %v1100_v28 = vpop.xlane.xlu1 %1099 }
 0x1c4   : > { %v1101_v31 = vsub.f32 %v1094_v14, %v1100_v28  ;;  %v1011_v33 = vmul.f32 1.442695, %v1010_v19 }
 0x1c6   : > { %v1102_v32 = vmul.f32 1.442695, %v1101_v31 }
 0x1c8   : > { %1929 = vpow2.f32 %v1102_v32 }
 0x1c9   : > { %1931 = vpow2.f32 %v1011_v33 }
 0x1ce   : > { %v1930_v36 = vpop.eup %1929 }
 0x1cf   : > { %v1932_v37 = vpop.eup %1931  ;;  %v1108_v38 = vpack.c.bf16 %v1930_v36, %v1930_v36  ;;  %v1104_v39 = vsel %vm986_vm3, %v1930_v36, 0.0  ;;  %v1807_v36 = vld [vmem:[%s2464_s9 + $0xc] sm:$0xf] }
 0x1d0   : > { %v1017_v40 = vpack.c.bf16 %v1932_v37, %v1932_v37  ;;  %1105 = vadd.xlane.f32.xlu0 %v1104_v39  ;;  %v1013_v12 = vsel %vm986_vm3, %v1932_v37, 0.0  ;;  %v1382_v37 = vsel %vm990_vm2, %v1807_v36, 0 }
 0x1d1   : > { %1769 = vmatmul.msk.bf16.vlgmr.msrb.gmra.mxu1 %vm986_vm3, %v1108_v38 }
 0x1d2   : > { %1753 = vmatmul.msk.bf16.vlgmr.msra.gmra.mxu2 %vm986_vm3, %v1017_v40 }
 0x1d3   : > { %1255 = vmatpush.bf16.msra.mxu2 %v1246_v59 }
 0x1db   : > { %v822_v43 = vpop.permute.xlu1 %821 }
 0x1dc   : > { %v837_v45 = vadd.f32 %v2286_v44, %v822_v43  ;;  %v1921_v44 = vld [vmem:[%s2508_s4 + $0x3] ss:$0 sm:$0xff]  ;;  %s1568_s4 = sshll.u32 %s1564_s1, 4  ;;  %s1569_s4 = int_to_ptr.hbm [resolvable:$true] %s1568_s4 }
 0x1dd   : > { %v1317_v54 = vadd.f32 %v1921_v44, %v1316_v41  ;;  %s1965_s3 = sshra.s32 %s1569_s4, 4  ;;  %s1966_s3 = int_to_ptr.hbm [resolvable:$true] %s1965_s3 }
 0x1de   : > { %v840_v46 = vpack.c.bf16 %v837_v45, %v837_v45  ;;  %s1967_s19 = scalar_lea.hbm %s1966_s3, 8  ;;  %p1972_p1 = scmp.lt.s32.totalorder %s1966_s3, %s2509_s23 }
 0x1df   : > { %v1320_v55 = vpack.c.bf16 %v1317_v54, %v1317_v54  ;;  %p1968_p12 = scmp.ne.s32.totalorder %s1966_s3, %s1967_s19  ;;  %p1973_p2 = scmp.lt.s32.totalorder %s1971_s22, %s1967_s19 }
 0x1e0   : > { %842 = vst.msk [vmem:[#allocation2 + $0x8] sm:$0xf] %vm709_vm1, %v840_v46 }
 0x1e1   : > { %p1969_p13 = pnand %p1968_p12, %p2173_p4  ;;  %p1974_p3 = por %p1973_p2, %p1972_p1 }
 0x1e3   : > { %p1970_p0 = pneg %p1969_p13 }
 0x1e5   : > { %p1975_p5 = pnand %p1974_p3, %p1970_p0 }
 0x1e7   : > { %v1209_v50 = vld [vmem:[#allocation2 + $0x8] sm:$0xf] }
 0x1e8   : > { %v1214_v53 = vsel %vm990_vm2, %v1209_v50, 0 }
 0x1e9   : > { %1223 = vmatpush.bf16.msra.mxu1 %v1214_v53 }
 0x1ec   : > { %1787 = vmatmul.msk.bf16.vlgmr.msra.gmra.mxu1 %vm986_vm3, %v1207_v52 }
 0x1ed   : > { %1336 = vmatpush.bf16.msrb.mxu1 %v1327_v51 }
 0x1fc   : > { %1805 = vmatmul.msk.bf16.vlgmr.msrb.gmra.mxu1 %vm986_vm3, %v1320_v55 }
 0x243   : > { %v1106_v60 = vpop.xlane.xlu0 %1105 }
 0x244   : > { %1933 = vrcp.f32 %v1106_v60 }
 0x24a   : > { %v1934_v61 = vpop.eup %1933 }
 0x24e   : > { %v1126_v62 = vpop.f32.mrf.mxu1 }
 0x24f   : > { %v1130_v63 = vmul.f32 %v1934_v61, %v1126_v62 }
 0x251   : > { %v1131_v1 = vpack.c.bf16 %v1130_v63, %v1130_v63  ;;  %v2032_v63 = vmov 32.0  }
 0x253   : > { %1771 = vmatmul.msk.bf16.vlgmr.msrb.gmra.mxu2 %vm986_vm3, %v1131_v1 }
 0x254   : > { %1368 = vmatpush.bf16.msrb.mxu2 %v1359_v2 }
 0x255   : > { %v1034_v3 = vpop.f32.mrf.mxu2 }
 0x256   : > { %v1128_v4 = vpop.f32.mrf.mxu1 }
 0x25d   : > { %v1036_v5 = vpop.f32.mrf.mxu2 }
 0x269   : > { %v1225_v6 = vpop.f32.mrf.mxu1 }
 0x26a   : > { %v1229_v7 = vsel %vm986_vm3, %v1225_v6, -inf }
 0x26b   : > { %1230 = vmax.xlane.f32.xlu1 %v1229_v7 }
 0x271   : > { %v1227_v8 = vpop.f32.mrf.mxu1 }
 0x279   : > { %v1338_v9 = vpop.f32.mrf.mxu1 }
 0x27a   : > { %v1342_v10 = vsel %vm986_vm3, %v1338_v9, -inf }
 0x27b   : > { %1343 = vmax.xlane.f32.xlu2 %v1342_v10 }
 0x281   : > { %v1340_v11 = vpop.f32.mrf.mxu1 }
 0x282   : > { %v1850_v11 = vld [vmem:[%s2468_s13] sm:$0xff] }
 0x283   : > { %1014 = vadd.xlane.f32.xlu2 %v1013_v12 }
 0x2d6   : > { %v1149_v13 = vpop.f32.mrf.mxu2 }
 0x2de   : > { %v1151_v14 = vpop.f32.mrf.mxu2  ;;  %v1231_v15 = vpop.xlane.xlu1 %1230 }
 0x2df   : > { %v1232_v17 = vsub.f32 %v1225_v6, %v1231_v15 }
 0x2e1   : > { %v1233_v21 = vmul.f32 1.442695, %v1232_v17 }
 0x2e3   : > { %1935 = vpow2.f32 %v1233_v21 }
 0x2e9   : > { %v1936_v22 = vpop.eup %1935 }
 0x2ea   : > { %v1239_v23 = vpack.c.bf16 %v1936_v22, %v1936_v22  ;;  %v1235_v24 = vsel %vm986_vm3, %v1936_v22, 0.0 }
 0x2eb   : > { %1236 = vadd.xlane.f32.xlu0 %v1235_v24 }
 0x2ec   : > { %1788 = vmatmul.msk.bf16.vlgmr.msra.gmra.mxu2 %vm986_vm3, %v1239_v23  ;;  %v1923_v23 = vld [vmem:[%s2466_s11] ss:$0 sm:$0xff] }
 0x2ee   : > { %v1344_v25 = vpop.xlane.xlu2 %1343 }
 0x2ef   : > { %v1345_v26 = vsub.f32 %v1338_v9, %v1344_v25 }
 0x2f1   : > { %v1346_v27 = vmul.f32 1.442695, %v1345_v26  ;;  %v1924_v26 = vld [vmem:[%s2467_s12] ss:$0 sm:$0xff] }
 0x2f3   : > { %1937 = vpow2.f32 %v1346_v27 }
 0x2f6   : > { %v1015_v28 = vpop.xlane.xlu2 %1014 }
 0x2f7   : > { %1939 = vrcp.f32 %v1015_v28 }
 0x2f9   : > { %v1938_v29 = vpop.eup %1937 }
 0x2fa   : > { %v1352_v30 = vpack.c.bf16 %v1938_v29, %v1938_v29  ;;  %v1348_v31 = vsel %vm986_vm3, %v1938_v29, 0.0 }
 0x2fb   : > { %1349 = vadd.xlane.f32.xlu2 %v1348_v31  ;;  %v1852_v31 = vld [vmem:[%s2470_s15] sm:$0xff] }
 0x2fc   : > { %1806 = vmatmul.msk.bf16.vlgmr.msrb.gmra.mxu2 %vm986_vm3, %v1352_v30  ;;  %v1853_v30 = vld [vmem:[%s2470_s15 + $0x8] sm:$0xff] }
 0x2fd   : > { %v1940_v19 = vpop.eup %1939  ;;  %1511 = vmatpush.bf16.msra.mxu1 %v1853_v30 }
 0x2fe   : > { %v1038_v32 = vmul.f32 %v1940_v19, %v1034_v3  ;;  %v1925_v19 = vld [vmem:[%s2469_s14] ss:$0 sm:$0xff] }
 0x300   : > { %v1039_v33 = vpack.c.bf16 %v1038_v32, %v1038_v32 }
 0x301   : > { %1512 = vmatpush.bf16.msra.mxu1 %v1852_v31 }
 0x302   : > { %1772 = vmatmul.msk.bf16.vlgmr.msrb.gmra.mxu3 %vm986_vm3, %v1039_v33 }
 0x303   : > { %1391 = vmatpush.bf16.msrb.mxu3 %v1382_v37  ;;  %v1926_v37 = vld [vmem:[%s2471_s16] ss:$0 sm:$0xff] }
 0x35e   : > { %v1237_v38 = vpop.xlane.xlu0 %1236 }
 0x35f   : > { %1941 = vrcp.f32 %v1237_v38 }
 0x365   : > { %v1942_v39 = vpop.eup %1941 }
 0x36e   : > { %v1350_v43 = vpop.xlane.xlu2 %1349 }
 0x36f   : > { %v1257_v40 = vpop.f32.mrf.mxu2  ;;  %1943 = vrcp.f32 %v1350_v43 }
 0x370   : > { %v1261_v41 = vmul.f32 %v1942_v39, %v1257_v40  ;;  %1945 = vrcp.f32 %v2032_v63 }
 0x372   : > { %v1262_v42 = vpack.c.bf16 %v1261_v41, %v1261_v41 }
 0x374   : > { %1790 = vmatmul.msk.bf16.vlgmr.msra.gmra.mxu3 %vm986_vm3, %v1262_v42 }
 0x375   : > { %v1944_v46 = vpop.eup %1943 }
 0x376   : > { %v1946_v0 = vpop.eup %1945 }
 0x377   : > { %v1259_v45 = vpop.f32.mrf.mxu2  ;;  %v1410_v1 = vmul.f32 32.0, %v1946_v0  ;;  %vm1414_vm4 = vweird.f32 %v1946_v0 }
 0x379   : > { %v1411_v2 = vsub.f32 1.0, %v1410_v1 }
 0x37b   : > { %v1412_v3 = vmul.f32 %v1946_v0, %v1411_v2 }
 0x37d   : > { %v1413_v4 = vadd.f32 %v1946_v0, %v1412_v3 }
 0x37f   : > { %v1370_v47 = vpop.f32.mrf.mxu2  ;;  %v1415_v5 = vsel %vm1414_vm4, %v1946_v0, %v1413_v4 }
 0x380   : > { %v1374_v48 = vmul.f32 %v1944_v46, %v1370_v47 }
 0x382   : > { %v1375_v49 = vpack.c.bf16 %v1374_v48, %v1374_v48 }
 0x384   : > { %1808 = vmatmul.msk.bf16.vlgmr.msrb.gmra.mxu3 %vm986_vm3, %v1375_v49 }
 0x385   : > { %v1168_v50 = vpop.f32.mrf.mxu3 }
 0x386   : > { %v1169_v54 = vadd.f32 %v1168_v50, %v1149_v13 }
 0x387   : > { %v1372_v51 = vpop.f32.mrf.mxu2 }
 0x38d   : > { %v1170_v52 = vpop.f32.mrf.mxu3 }
 0x3f7   : > { %v1280_v53 = vpop.f32.mrf.mxu3 }
 0x3f8   : > { %v1284_v55 = vadd.f32 %v1280_v53, %v1169_v54 }
 0x3ff   : > { %v1282_v44 = vpop.f32.mrf.mxu3 }
 0x407   : > { %v1393_v57 = vpop.f32.mrf.mxu3 }
 0x408   : > { %v1397_v58 = vadd.f32 %v1393_v57, %v1284_v55  ;;  %v1927_v57 = vld [vmem:[%s2472_s17] ss:$0 sm:$0xff] }
 0x40a   : > { %v1402_v59 = vadd.f32 %v1922_v56, %v1397_v58 }
 0x40c   : > { %v1403_v60 = vadd.f32 %v1402_v59, %v2251_v18  ;;  %v1851_v18 = vld [vmem:[%s2468_s13 + $0x8] sm:$0xff] }
 0x40d   : > { %1473 = vmatpush.bf16.msra.mxu0 %v1851_v18 }
 0x40e   : > { %v1406_v61 = vsel %vm691_vm0, %v1403_v60, 0.0 }
 0x40f   : > { %1407 = vadd.xlane.f32.xlu0 %v1406_v61  ;;  %v1395_v62 = vpop.f32.mrf.mxu3 }
 0x411   : > { %1474 = vmatpush.bf16.msra.mxu0 %v1850_v11 }
 0x482   : > { %v1408_v6 = vpop.xlane.xlu0 %1407 }
 0x483   : > { %v1416_v7 = vmul.f32 %v1415_v5, %v1408_v6 }
 0x485   : > { %v1417_v8 = vsub.f32 %v1403_v60, %v1416_v7  ;;  %v1928_v60 = vld [vmem:[%s2511_s2] ss:$0 sm:$0xff] }
 0x487   : > { %v1418_v9 = vmul.f32 %v1417_v8, %v1417_v8 }
 0x489   : > { %v1419_v10 = vsel %vm691_vm0, %v1418_v9, 0.0 }
 0x48a   : > { %1420 = vadd.xlane.f32.xlu2 %v1419_v10 }
 0x4fd   : > { %v1421_v12 = vpop.xlane.xlu2 %1420 }
 0x4fe   : > { %v1422_v13 = vmul.f32 %v1421_v12, %v1415_v5 }
 0x500   : > { %v1423_v14 = vadd.f32 1e-05, %v1422_v13 }
 0x502   : > { %1947 = vrsqrt.f32 %v1423_v14  ;;  %vm1430_vm6 = vweird.f32 %v1423_v14 }
 0x508   : > { %v1948_v15 = vpop.eup %1947 }
 0x509   : > { %v1425_v16 = vmul.f32 %v1948_v15, %v1423_v14  ;;  %vm1431_vm5 = vweird.f32 %v1948_v15 }
 0x50a   : > { %vm1432_vm7 = vmor %vm1430_vm6, %vm1431_vm5 }
 0x50b   : > { %v1426_v17 = vmul.f32 %v1948_v15, %v1425_v16 }
 0x50d   : > { %v1427_v20 = vmul.f32 0.5, %v1426_v17 }
 0x50f   : > { %v1428_v21 = vsub.f32 1.5, %v1427_v20 }
 0x511   : > { %v1429_v22 = vmul.f32 %v1948_v15, %v1428_v21 }
 0x513   : > { %v1433_v24 = vsel %vm1432_vm7, %v1948_v15, %v1429_v22 }
 0x514   : > { %v1434_v25 = vmul.f32 %v1433_v24, %v1417_v8 }
 0x516   : > { %v1438_v27 = vmul.f32 %v1923_v23, %v1434_v25 }
 0x518   : > { %v1442_v28 = vadd.f32 %v1924_v26, %v1438_v27 }
 0x51a   : > { %v1443_v29 = vpack.c.bf16 %v1442_v28, %v1442_v28 }
 0x51c   : > { %1817 = vmatmul.msk.bf16.vlgmr.msra.gmra.mxu0 %vm691_vm0, %v1443_v29 }
 0x599   : > { %v1476_v32 = vpop.f32.mrf.mxu0 }
 0x59a   : > { %v1477_v33 = vadd.f32 %v1925_v19, %v1476_v32 }
 0x59c   : > { %v1480_v34 = vmax.f32 %v1477_v33, 0.0 }
 0x59e   : > { %v1481_v35 = vpack.c.bf16 %v1480_v34, %v1480_v34 }
 0x5a0   : > { %1826 = vmatmul.msk.bf16.vlgmr.msra.gmra.mxu1 %vm691_vm0, %v1481_v35 }
 0x5a1   : > { %v1478_v36 = vpop.f32.mrf.mxu0 }
 0x61d   : > { %v1514_v38 = vpop.f32.mrf.mxu1 }
 0x61e   : > { %v1515_v39 = vadd.f32 %v1926_v37, %v1514_v38 }
 0x620   : > { %v1518_v40 = vadd.f32 %v1515_v39, %v1402_v59 }
 0x622   : > { %v1521_v41 = vsel %vm691_vm0, %v1518_v40, 0.0 }
 0x623   : > { %1522 = vadd.xlane.f32.xlu0 %v1521_v41 }
 0x625   : > { %v1516_v42 = vpop.f32.mrf.mxu1 }
 0x696   : > { %v1523_v43 = vpop.xlane.xlu0 %1522 }
 0x697   : > { %v1524_v45 = vmul.f32 %v1523_v43, %v1415_v5 }
 0x699   : > { %v1525_v46 = vsub.f32 %v1518_v40, %v1524_v45 }
 0x69b   : > { %v1526_v47 = vmul.f32 %v1525_v46, %v1525_v46 }
 0x69d   : > { %v1527_v48 = vsel %vm691_vm0, %v1526_v47, 0.0 }
 0x69e   : > { %1528 = vadd.xlane.f32.xlu1 %v1527_v48 }
 0x711   : > { %v1529_v49 = vpop.xlane.xlu1 %1528 }
 0x712   : > { %v1530_v50 = vmul.f32 %v1529_v49, %v1415_v5 }
 0x714   : > { %v1531_v51 = vadd.f32 1e-05, %v1530_v50 }
 0x716   : > { %1949 = vrsqrt.f32 %v1531_v51  ;;  %vm1538_vm9 = vweird.f32 %v1531_v51 }
 0x71c   : > { %v1950_v52 = vpop.eup %1949 }
 0x71d   : > { %v1533_v53 = vmul.f32 %v1950_v52, %v1531_v51  ;;  %vm1539_vm8 = vweird.f32 %v1950_v52 }
 0x71e   : > { %vm1540_vm10 = vmor %vm1538_vm9, %vm1539_vm8 }
 0x71f   : > { %v1534_v44 = vmul.f32 %v1950_v52, %v1533_v53 }
 0x721   : > { %v1535_v54 = vmul.f32 0.5, %v1534_v44 }
 0x723   : > { %v1536_v55 = vsub.f32 1.5, %v1535_v54 }
 0x725   : > { %v1537_v56 = vmul.f32 %v1950_v52, %v1536_v55 }
 0x727   : > { %v1541_v58 = vsel %vm1540_vm10, %v1950_v52, %v1537_v56 }
 0x728   : > { %v1542_v59 = vmul.f32 %v1541_v58, %v1525_v46 }
 0x72a   : > { %v1546_v61 = vmul.f32 %v1927_v57, %v1542_v59 }
 0x72c   : > { %v1550_v62 = vadd.f32 %v1928_v60, %v1546_v61 }
 0x72e   : > { %1551 = vst.msk [vmem:[%s643_s0] sm:$0xff] %vm691_vm0, %v1550_v62 }
 0x72f   : > { %1978 = shalt.err (!%p1975_p5)
}
 0x730   : > { %1854 = dma.vmem_to_hbm [thread:$0]  (%p2173_p4), %s1567_s21, 128, %s1569_s4, %s1553_s18  }
 0x731 PF: > { %s2512_s20 = sld [smem:[#allocation10_spill]] }
 0x732   : > { %s2513_s29 = sld [smem:[#allocation7_spill]] }
 0x737   : > { %p1860_p6 = scmp.ge.s32.totalorder %s2512_s20, 2 }
 0x738   : > { %s1580_s0 = sand.u32 1, %s2513_s29  }
 0x739   : > { %p1857_p7 = pnand %p1860_p6, %p2180_p8  ;;  %s1581_s28 = scalar_lea.sflag [#allocation5], %s1580_s0 }
 0x73b   : > { %p1858_p9 = pneg %p1857_p7 }
 0x73d   : > { %2004 = dma.done.wait (%p1858_p9), %s1581_s28, 128  }
 0x73e   : > { %2006 = vsyncadd (%p1858_p9), %s1581_s28, 4294967168  ;;  %s32_s22 = sadd.s32 1, %s2512_s20   ;;  %s2515_s3 = sld [smem:[#allocation8_spill]] }
 0x73f   : > { %p29_p10 = scmp.ge.s32.totalorder %s32_s22, 4   ;;  %s2516_s20 = sld [smem:[#allocation14_spill]] }
 0x740   : > { %s2517_s21 = sld [smem:[#allocation9_spill]]  ;;  %s2519_s0 = smov %s2013_s30 }
 0x741   : > { %s2518_s1 = sld [smem:[#allocation11_spill]]  ;;  %31 = sbr.rel (!%p29_p10) target bundleno = 12 (0xc), region = 174 }
 0x744   : > { %s2520_s30 = smov %s2515_s3 }
 0x746   :  { %1587 = vsyncpa [#allocation5], 1 }
 0x747   :  { %1589 = vsyncpa [#allocation5 + $0x1], 1 }

</bundles_post_ra>
